<compile_context>
chip_gen: v6e
topology: v6e:2x2x1
jax: 0.10.0
libtpu: 0.0.40
codegen_flags: <defaults>
</compile_context>

<pallas_src>
import functools

import numpy as np
import jax
import jax.numpy as jnp
from jax.experimental import pallas as pl
from jax.experimental.pallas import tpu as pltpu


# ----------------------------------------------------------------------------
# one-time parameter preparation (hoisted out of the per-call path)
# ----------------------------------------------------------------------------
def fold_linear_bn(W, b, gamma, beta, mean, var, eps=1e-5):
    """Fold eval-mode BatchNorm1d into the preceding Linear (y = xW + b)."""
    s = gamma / jnp.sqrt(var + eps)
    return W * s[None, :], b * s + (beta - mean * s)


def prepare_params(params, dtype=jnp.float32):
    """Fold BN, merge layers, and pre-multiply the block-placed embedding table
    with the merged layer-1 weights.  Run ONCE; the forward pass consumes this."""
    bb_emb = params["bb_emb"]        # list of (v_f, E) tables, backbone fields
    item_emb = params["item_emb"]    # list of (v_g, E) tables, item fields
    embed_dim = int(bb_emb[0].shape[1])
    n_bb, n_it = len(bb_emb), len(item_emb)
    d_bb, d_it = n_bb * embed_dim, n_it * embed_dim          # 208, 96
    v_bb = sum(int(t.shape[0]) for t in bb_emb)
    v_it = sum(int(t.shape[0]) for t in item_emb)
    vtot = v_bb + v_it                                        # 346

    # block-placed combined embedding table  T : (vtot, d_bb + d_it)
    T = jnp.zeros((vtot, d_bb + d_it), jnp.float32)
    offs, row = [], 0
    for f, t in enumerate(bb_emb):
        offs.append(row)
        T = T.at[row:row + t.shape[0], f * embed_dim:(f + 1) * embed_dim].set(t)
        row += int(t.shape[0])
    for g, t in enumerate(item_emb):
        offs.append(row)
        T = T.at[row:row + t.shape[0],
                 d_bb + g * embed_dim:d_bb + (g + 1) * embed_dim].set(t)
        row += int(t.shape[0])
    offsets = jnp.asarray(offs, jnp.int32)                    # (19,)

    bw1, bb1, bw2, bb2, bw3, bb3 = params["bb_mlp"]
    p = params["pcp"]
    pw1, pb1 = fold_linear_bn(p["w1"], p["b1"], *p["bn1"])
    pw2, pb2 = fold_linear_bn(p["w2"], p["b2"], *p["bn2"])
    pw3, pb3 = p["w3"], p["b3"]
    wlin, blin = p["wlin"], p["blin"]

    h1 = int(bw1.shape[1])           # 64
    h2 = int(bw2.shape[1])           # 32
    n_day = int(wlin.shape[1])
    n_dense = int(bw1.shape[0]) - d_bb

    # merged layer-1 (sparse part) over outputs [h1 | g1 | xlin]
    w1s = jnp.zeros((d_bb + d_it, 2 * h1 + n_day), jnp.float32)
    w1s = w1s.at[:d_bb, :h1].set(bw1[:d_bb])
    w1s = w1s.at[d_bb:, h1:2 * h1].set(pw1[:d_it])
    w1s = w1s.at[d_bb:, 2 * h1:].set(wlin[:d_it])
    # merged layer-1 (dense part)
    w1d = jnp.concatenate([bw1[d_bb:], pw1[d_it:], wlin[d_it:]], axis=1)  # (4,135)
    b1c = jnp.concatenate([bb1, pb1, blin]).reshape(1, -1)                # (1,135)

    Wbig = T @ w1s                   # (vtot, 2*h1 + n_day): gather+concat+layer1

    # merged layer-2 (block diagonal) -> [h2 | g2]
    w2c = jnp.zeros((2 * h1, 2 * h2), jnp.float32)
    w2c = w2c.at[:h1, :h2].set(bw2)
    w2c = w2c.at[h1:, h2:].set(pw2)
    b2c = jnp.concatenate([bb2, pb2]).reshape(1, -1)                      # (1,64)

    # merged heads -> [ym_logit | proj_head(n_day)]
    w3c = jnp.zeros((2 * h2, 1 + n_day), jnp.float32)
    w3c = w3c.at[:h2, 0:1].set(bw3)
    w3c = w3c.at[h2:, 1:].set(pw3)
    b3c = jnp.concatenate([bb3, pb3]).reshape(1, -1)                      # (1,1+n_day)

    cast = lambda a: a.astype(dtype)
    return dict(offsets=offsets,
                Wbig=cast(Wbig), W1d=cast(w1d), b1c=b1c,
                W2c=cast(w2c), b2c=b2c, W3c=cast(w3c), b3c=b3c), \
           dict(n_day=n_day, n_sparse_bb=n_bb, n_dense=n_dense)


# ----------------------------------------------------------------------------
# fused Pallas kernel: embedding gather + backbone MLP + TimeSensPerceptron
# ----------------------------------------------------------------------------
def _sigmoid(z):
    # exact sigmoid (review: approx reciprocal deviates); exp still hits the EUP.
    return 1.0 / (1.0 + jnp.exp(-z))


def _fused_kernel(ids_ref, dense_ref, diff_ref,
                  wbig_ref, w1d_ref, b1_ref,
                  w2_ref, b2_ref, w3_ref, b3_ref,
                  out_ref, *, strategy, n_day):
    wdt = wbig_ref.dtype
    ids = ids_ref[...]                                    # (TB, 19) int32 global ids
    dense = dense_ref[...].astype(wdt)                    # (TB, 4)
    tb, nf = ids.shape
    vtot = wbig_ref.shape[0]

    # Fused gather+concat+layer1: build a multi-hot matrix over the global
    # vocabulary and do ONE MXU matmul against (emb_table @ merged_W1).
    vcols = jax.lax.broadcasted_iota(jnp.int32, (tb, vtot), 1)
    mh = jnp.zeros((tb, vtot), wdt)
    for f in range(nf):                                   # static unroll (19 fields)
        mh = mh + (vcols == ids[:, f][:, None]).astype(wdt)

    h_all = (jnp.dot(mh, wbig_ref[...], preferred_element_type=jnp.float32)
             + jnp.dot(dense, w1d_ref[...], preferred_element_type=jnp.float32)
             + b1_ref[...])                               # (TB, 128 + n_day)

    w128 = w2_ref.shape[0]                                # 128 = [h1 | g1]
    hg1 = jnp.maximum(h_all[:, :w128], 0.0)               # ReLU on both layer-1s
    xlin = h_all[:, w128:]                                # residual Linear(x)+blin

    hg2 = jnp.maximum(
        jnp.dot(hg1.astype(wdt), w2_ref[...], preferred_element_type=jnp.float32)
        + b2_ref[...], 0.0)                               # (TB, 64) = [h2 | g2]
    head = (jnp.dot(hg2.astype(wdt), w3_ref[...], preferred_element_type=jnp.float32)
            + b3_ref[...])                                # (TB, 1 + n_day)

    ym = _sigmoid(head[:, 0:1])
    hid = head[:, 1:] + xlin                              # (TB, n_day) == yt_mat

    # per-row day selection as ONE masked lane reduction (keeps the reference's
    # duplicate-count-at-boundary semantics for the 'smooth' strategy)
    diff = diff_ref[...]                                  # (TB, 1) int32
    dcols = jax.lax.broadcasted_iota(jnp.int32, (tb, n_day), 1)
    w = (dcols == diff).astype(jnp.float32)
    if strategy == "smooth":
        w = w + (dcols == jnp.maximum(diff - 1, 0)).astype(jnp.float32)
        w = w + (dcols == jnp.minimum(diff + 1, n_day - 1)).astype(jnp.float32)
        out = jnp.sum(hid * w, axis=1, keepdims=True) * (1.0 / 3.0)
    else:  # "raw"
        out = jnp.sum(hid * w, axis=1, keepdims=True)
    yt = _sigmoid(out)

    # single lane-contiguous output slab: [ym | yt | yt_mat]
    out_ref[...] = jnp.concatenate([ym, yt, hid], axis=1)


def _round_up(x, m):
    return (x + m - 1) // m * m


def ours_fused_call(ids, dense, diff, prep, *, strategy, n_day, tb=1024):
    """One pallas_call computing the (B, n_day+2) slab [ym | yt | yt_mat].
    Batch is padded to a multiple of the tile (never a single giant block)."""
    B = ids.shape[0]
    tb = max(8, min(tb, _round_up(B, 8)))
    tb = _round_up(tb, 8)
    Bp = _round_up(B, tb)
    if Bp != B:
        pad = Bp - B
        ids = jnp.pad(ids, ((0, pad), (0, 0)))
        dense = jnp.pad(dense, ((0, pad), (0, 0)))
        diff = jnp.pad(diff, ((0, pad), (0, 0)))
    nb = Bp // tb

    weights = (prep["Wbig"], prep["W1d"], prep["b1c"],
               prep["W2c"], prep["b2c"], prep["W3c"], prep["b3c"])

    def bspec(shape):
        nd = len(shape)
        return pl.BlockSpec((tb,) + tuple(shape[1:]),
                            lambda i, _nd=nd: (i,) + (0,) * (_nd - 1))

    def wspec(shape):
        nd = len(shape)
        return pl.BlockSpec(tuple(shape), lambda i, _nd=nd: (0,) * _nd)

    kernel = functools.partial(_fused_kernel, strategy=strategy, n_day=n_day)
    out = pl.pallas_call(
        kernel,
        out_shape=jax.ShapeDtypeStruct((Bp, n_day + 2), jnp.float32),
        grid=(nb,),
        in_specs=[bspec(ids.shape), bspec(dense.shape), bspec(diff.shape)]
                 + [wspec(w.shape) for w in weights],
        out_specs=bspec((Bp, n_day + 2)),
        # v7x note: use dimension_semantics=(pltpu.CORE_PARALLEL,) to shard the
        # batch grid across the two TensorCores.
        compiler_params=pltpu.CompilerParams(dimension_semantics=("parallel",)),
    )(ids, dense, diff, *weights)
    return out[:B]


# ----------------------------------------------------------------------------
# OURS forward (thin glue: id column select + offsets, then fused kernel)
# ----------------------------------------------------------------------------
def ours_forward(x, diff, prep, *, strategy, n_day, item_cols,
                 n_sparse_bb, n_dense, tb=1024):
    ids_bb = x[:, :n_sparse_bb].astype(jnp.int32)                        # (B,13)
    ids_item = x[:, jnp.asarray(item_cols, jnp.int32)].astype(jnp.int32) # (B,6)
    ids = jnp.concatenate([ids_bb, ids_item], axis=1) + prep["offsets"][None, :]
    dense = x[:, n_sparse_bb:n_sparse_bb + n_dense].astype(jnp.float32)  # (B,4)
    diff = diff.reshape(-1, 1).astype(jnp.int32)

    out = ours_fused_call(ids, dense, diff, prep,
                          strategy=strategy, n_day=n_day, tb=tb)
    return out[:, 0:1], out[:, 1:2], out[:, 2:]


# ----------------------------------------------------------------------------
# pure-JAX reference (unfused, un-folded) for validation
# ----------------------------------------------------------------------------
def ours_reference(x, diff, params, *, strategy, n_day, item_cols):
    n_bb = len(params["bb_emb"])
    ids_bb = x[:, :n_bb].astype(jnp.int32)
    dense = x[:, n_bb:n_bb + 4].astype(jnp.float32)
    emb_bb = jnp.concatenate(
        [params["bb_emb"][f][ids_bb[:, f]] for f in range(n_bb)], axis=1)
    bb_in = jnp.concatenate([emb_bb, dense], axis=1)
    w1, b1, w2, b2, w3, b3 = params["bb_mlp"]
    h = jax.nn.relu(bb_in @ w1 + b1)
    h = jax.nn.relu(h @ w2 + b2)
    ym = jax.nn.sigmoid(h @ w3 + b3)

    ids_it = x[:, jnp.asarray(item_cols, jnp.int32)].astype(jnp.int32)
    emb_it = jnp.concatenate(
        [params["item_emb"][g][ids_it[:, g]] for g in range(len(item_cols))], axis=1)
    px = jnp.concatenate([emb_it, dense], axis=1)
    p = params["pcp"]

    def bn(h, bnp):
        g, beta, mean, var = bnp
        return (h - mean) / jnp.sqrt(var + 1e-5) * g + beta

    x_orig = px @ p["wlin"] + p["blin"]
    hh = jax.nn.relu(bn(px @ p["w1"] + p["b1"], p["bn1"]))
    hh = jax.nn.relu(bn(hh @ p["w2"] + p["b2"], p["bn2"]))
    hid = hh @ p["w3"] + p["b3"] + x_orig

    d = diff.reshape(-1)
    idx = jnp.arange(x.shape[0])
    out = hid[idx, d]
    if strategy == "smooth":
        out = out + hid[idx, jnp.maximum(d - 1, 0)]
        out = out + hid[idx, jnp.minimum(d + 1, n_day - 1)]
        out = out / 3.0
    yt = jax.nn.sigmoid(out)[:, None]
    return ym, yt, hid


# ----------------------------------------------------------------------------
# deterministic parameter construction
# ----------------------------------------------------------------------------
def init_params(key, *, n_day, vocab_cols, item_cols, embed_dim=16, dense_dim=4):
    keys = iter(jax.random.split(key, 64))

    def lin(k_in, k_out):
        kw, kb = jax.random.split(next(keys))
        w = jax.random.normal(kw, (k_in, k_out), jnp.float32) * 0.05
        b = jax.random.normal(kb, (k_out,), jnp.float32) * 0.05
        return w, b

    def bn(dim):
        g = 1.0 + 0.1 * jax.random.normal(next(keys), (dim,), jnp.float32)
        beta = 0.1 * jax.random.normal(next(keys), (dim,), jnp.float32)
        mean = 0.1 * jax.random.normal(next(keys), (dim,), jnp.float32)
        var = jnp.abs(jax.random.normal(next(keys), (dim,), jnp.float32)) + 0.5
        return g, beta, mean, var

    bb_emb = [jax.random.normal(next(keys), (v, embed_dim), jnp.float32) * 0.01
              for v in vocab_cols]
    bb_in_dim = len(vocab_cols) * embed_dim + dense_dim
    w1, b1 = lin(bb_in_dim, 64)
    w2, b2 = lin(64, 32)
    w3, b3 = lin(32, 1)
    bb_mlp = (w1, b1, w2, b2, w3, b3)

    item_emb = [jax.random.normal(next(keys), (vocab_cols[c], embed_dim),
                                  jnp.float32) * 0.01 for c in item_cols]
    E = len(item_cols) * embed_dim + dense_dim                      # 100

    wlin, blin = lin(E, n_day)
    pw1, pb1 = lin(E, 64)
    pw2, pb2 = lin(64, 32)
    pw3, pb3 = lin(32, n_day)
    pcp = dict(wlin=wlin, blin=blin,
               w1=pw1, b1=pb1, bn1=bn(64),
               w2=pw2, b2=pb2, bn2=bn(32),
               w3=pw3, b3=pb3)

    return dict(bb_emb=bb_emb, bb_mlp=bb_mlp, item_emb=item_emb, pcp=pcp)


# ----------------------------------------------------------------------------
if __name__ == "__main__":
    key = jax.random.PRNGKey(0)
    B = 8
    n_day = 7
    strategy = "smooth"
    # per-column vocab sizes for x columns 0..12 (sparse); columns 13..16 dense
    vocab_cols = [30, 50, 40, 10, 10, 10, 10, 10, 10, 10, 12, 8, 6]
    item_cols = (1, 2, 9, 10, 11, 12)

    k_x, k_d, k_dense, k_p = jax.random.split(key, 4)
    id_keys = jax.random.split(k_x, len(vocab_cols))
    sparse_part = jnp.stack(
        [jax.random.randint(id_keys[i], (B,), 0, vocab_cols[i]).astype(jnp.float32)
         for i in range(len(vocab_cols))], axis=1)
    dense_part = jax.random.normal(k_dense, (B, 4), jnp.float32)
    x = jnp.concatenate([sparse_part, dense_part], axis=1)          # (B, 17)
    diff = jax.random.randint(k_d, (B, 1), 0, n_day).astype(jnp.int32)

    params = init_params(k_p, n_day=n_day, vocab_cols=vocab_cols,
                         item_cols=item_cols, embed_dim=16, dense_dim=4)
    prep, meta = prepare_params(params, dtype=jnp.float32)

    fwd = jax.jit(functools.partial(
        ours_forward, strategy=strategy, n_day=meta["n_day"], item_cols=item_cols,
        n_sparse_bb=meta["n_sparse_bb"], n_dense=meta["n_dense"], tb=1024))
    ym, yt, yt_mat = fwd(x, diff, prep)
    jax.block_until_ready((ym, yt, yt_mat))

    assert ym.shape == (B, 1)
    assert yt.shape == (B, 1)
    assert yt_mat.shape == (B, n_day)

    # validate BN folding, layer merging, one-hot gather, smooth boundary rule
    rym, ryt, rmat = ours_reference(x, diff, params, strategy=strategy,
                                    n_day=n_day, item_cols=item_cols)
    err = max(float(jnp.max(jnp.abs(ym - rym))),
              float(jnp.max(jnp.abs(yt - ryt))),
              float(jnp.max(jnp.abs(yt_mat - rmat))))
    assert err < 1e-3, f"mismatch vs reference: {err}"
    print("KERNEL_OK")
</pallas_src>

<mosaic_0001>
module attributes {stable_mosaic.version = 11 : i64} {
  func.func @_fused_kernel(%arg0: i32, %arg1: memref<8x19xi32, #tpu.memory_space<vmem>>, %arg2: memref<8x4xf32, #tpu.memory_space<vmem>>, %arg3: memref<8x1xi32, #tpu.memory_space<vmem>>, %arg4: memref<342x135xf32, #tpu.memory_space<vmem>>, %arg5: memref<4x135xf32, #tpu.memory_space<vmem>>, %arg6: memref<1x135xf32, #tpu.memory_space<vmem>>, %arg7: memref<128x64xf32, #tpu.memory_space<vmem>>, %arg8: memref<1x64xf32, #tpu.memory_space<vmem>>, %arg9: memref<64x8xf32, #tpu.memory_space<vmem>>, %arg10: memref<1x8xf32, #tpu.memory_space<vmem>>, %arg11: memref<8x9xf32, #tpu.memory_space<vmem>>) attributes {dimension_semantics = [#tpu.dimension_semantics<parallel>], iteration_bounds = array<i64: 1>, scalar_prefetch = 0 : i64, scratch_operands = 0 : i64, tpu.core_type = #tpu.core_type<tc>, window_params = [{transform_indices = @transform_0, window_bounds = array<i64: 8, 19>}, {transform_indices = @transform_1, window_bounds = array<i64: 8, 4>}, {transform_indices = @transform_2, window_bounds = array<i64: 8, 1>}, {pipeline_mode = #tpu.pipeline_mode<synchronous>, transform_indices = @transform_3, window_bounds = array<i64: 342, 135>}, {pipeline_mode = #tpu.pipeline_mode<synchronous>, transform_indices = @transform_4, window_bounds = array<i64: 4, 135>}, {pipeline_mode = #tpu.pipeline_mode<synchronous>, transform_indices = @transform_5, window_bounds = array<i64: 1, 135>}, {pipeline_mode = #tpu.pipeline_mode<synchronous>, transform_indices = @transform_6, window_bounds = array<i64: 128, 64>}, {pipeline_mode = #tpu.pipeline_mode<synchronous>, transform_indices = @transform_7, window_bounds = array<i64: 1, 64>}, {pipeline_mode = #tpu.pipeline_mode<synchronous>, transform_indices = @transform_8, window_bounds = array<i64: 64, 8>}, {pipeline_mode = #tpu.pipeline_mode<synchronous>, transform_indices = @transform_9, window_bounds = array<i64: 1, 8>}, {transform_indices = @transform_10, window_bounds = array<i64: 8, 9>}]} {
    %c0 = arith.constant 0 : index
    %c0_0 = arith.constant 0 : index
    %0 = vector.load %arg1[%c0, %c0_0] : memref<8x19xi32, #tpu.memory_space<vmem>>, vector<8x19xi32>
    %c0_1 = arith.constant 0 : index
    %c0_2 = arith.constant 0 : index
    %1 = vector.load %arg2[%c0_1, %c0_2] : memref<8x4xf32, #tpu.memory_space<vmem>>, vector<8x4xf32>
    %2 = tpu.iota {dimensions = array<i32: 1>} : vector<8x342xi32>
    %cst = arith.constant 0.000000e+00 : f32
    %3 = vector.broadcast %cst : f32 to vector<8x342xf32>
    %4 = vector.extract_strided_slice %0 {offsets = [0, 0], sizes = [8, 1], strides = [1, 1]} : vector<8x19xi32> to vector<8x1xi32>
    %5 = vector.shape_cast %4 : vector<8x1xi32> to vector<8xi32>
    %6 = vector.shape_cast %5 : vector<8xi32> to vector<8x1xi32>
    %7 = vector.broadcast %6 : vector<8x1xi32> to vector<8x342xi32>
    %8 = arith.cmpi eq, %2, %7 : vector<8x342xi32>
    %9 = arith.extui %8 : vector<8x342xi1> to vector<8x342xi32>
    %10 = arith.sitofp %9 : vector<8x342xi32> to vector<8x342xf32>
    %11 = arith.addf %3, %10 : vector<8x342xf32>
    %12 = vector.extract_strided_slice %0 {offsets = [0, 1], sizes = [8, 1], strides = [1, 1]} : vector<8x19xi32> to vector<8x1xi32>
    %13 = vector.shape_cast %12 : vector<8x1xi32> to vector<8xi32>
    %14 = vector.shape_cast %13 : vector<8xi32> to vector<8x1xi32>
    %15 = vector.broadcast %14 : vector<8x1xi32> to vector<8x342xi32>
    %16 = arith.cmpi eq, %2, %15 : vector<8x342xi32>
    %17 = arith.extui %16 : vector<8x342xi1> to vector<8x342xi32>
    %18 = arith.sitofp %17 : vector<8x342xi32> to vector<8x342xf32>
    %19 = arith.addf %11, %18 : vector<8x342xf32>
    %20 = vector.extract_strided_slice %0 {offsets = [0, 2], sizes = [8, 1], strides = [1, 1]} : vector<8x19xi32> to vector<8x1xi32>
    %21 = vector.shape_cast %20 : vector<8x1xi32> to vector<8xi32>
    %22 = vector.shape_cast %21 : vector<8xi32> to vector<8x1xi32>
    %23 = vector.broadcast %22 : vector<8x1xi32> to vector<8x342xi32>
    %24 = arith.cmpi eq, %2, %23 : vector<8x342xi32>
    %25 = arith.extui %24 : vector<8x342xi1> to vector<8x342xi32>
    %26 = arith.sitofp %25 : vector<8x342xi32> to vector<8x342xf32>
    %27 = arith.addf %19, %26 : vector<8x342xf32>
    %28 = vector.extract_strided_slice %0 {offsets = [0, 3], sizes = [8, 1], strides = [1, 1]} : vector<8x19xi32> to vector<8x1xi32>
    %29 = vector.shape_cast %28 : vector<8x1xi32> to vector<8xi32>
    %30 = vector.shape_cast %29 : vector<8xi32> to vector<8x1xi32>
    %31 = vector.broadcast %30 : vector<8x1xi32> to vector<8x342xi32>
    %32 = arith.cmpi eq, %2, %31 : vector<8x342xi32>
    %33 = arith.extui %32 : vector<8x342xi1> to vector<8x342xi32>
    %34 = arith.sitofp %33 : vector<8x342xi32> to vector<8x342xf32>
    %35 = arith.addf %27, %34 : vector<8x342xf32>
    %36 = vector.extract_strided_slice %0 {offsets = [0, 4], sizes = [8, 1], strides = [1, 1]} : vector<8x19xi32> to vector<8x1xi32>
    %37 = vector.shape_cast %36 : vector<8x1xi32> to vector<8xi32>
    %38 = vector.shape_cast %37 : vector<8xi32> to vector<8x1xi32>
    %39 = vector.broadcast %38 : vector<8x1xi32> to vector<8x342xi32>
    %40 = arith.cmpi eq, %2, %39 : vector<8x342xi32>
    %41 = arith.extui %40 : vector<8x342xi1> to vector<8x342xi32>
    %42 = arith.sitofp %41 : vector<8x342xi32> to vector<8x342xf32>
    %43 = arith.addf %35, %42 : vector<8x342xf32>
    %44 = vector.extract_strided_slice %0 {offsets = [0, 5], sizes = [8, 1], strides = [1, 1]} : vector<8x19xi32> to vector<8x1xi32>
    %45 = vector.shape_cast %44 : vector<8x1xi32> to vector<8xi32>
    %46 = vector.shape_cast %45 : vector<8xi32> to vector<8x1xi32>
    %47 = vector.broadcast %46 : vector<8x1xi32> to vector<8x342xi32>
    %48 = arith.cmpi eq, %2, %47 : vector<8x342xi32>
    %49 = arith.extui %48 : vector<8x342xi1> to vector<8x342xi32>
    %50 = arith.sitofp %49 : vector<8x342xi32> to vector<8x342xf32>
    %51 = arith.addf %43, %50 : vector<8x342xf32>
    %52 = vector.extract_strided_slice %0 {offsets = [0, 6], sizes = [8, 1], strides = [1, 1]} : vector<8x19xi32> to vector<8x1xi32>
    %53 = vector.shape_cast %52 : vector<8x1xi32> to vector<8xi32>
    %54 = vector.shape_cast %53 : vector<8xi32> to vector<8x1xi32>
    %55 = vector.broadcast %54 : vector<8x1xi32> to vector<8x342xi32>
    %56 = arith.cmpi eq, %2, %55 : vector<8x342xi32>
    %57 = arith.extui %56 : vector<8x342xi1> to vector<8x342xi32>
    %58 = arith.sitofp %57 : vector<8x342xi32> to vector<8x342xf32>
    %59 = arith.addf %51, %58 : vector<8x342xf32>
    %60 = vector.extract_strided_slice %0 {offsets = [0, 7], sizes = [8, 1], strides = [1, 1]} : vector<8x19xi32> to vector<8x1xi32>
    %61 = vector.shape_cast %60 : vector<8x1xi32> to vector<8xi32>
    %62 = vector.shape_cast %61 : vector<8xi32> to vector<8x1xi32>
    %63 = vector.broadcast %62 : vector<8x1xi32> to vector<8x342xi32>
    %64 = arith.cmpi eq, %2, %63 : vector<8x342xi32>
    %65 = arith.extui %64 : vector<8x342xi1> to vector<8x342xi32>
    %66 = arith.sitofp %65 : vector<8x342xi32> to vector<8x342xf32>
    %67 = arith.addf %59, %66 : vector<8x342xf32>
    %68 = vector.extract_strided_slice %0 {offsets = [0, 8], sizes = [8, 1], strides = [1, 1]} : vector<8x19xi32> to vector<8x1xi32>
    %69 = vector.shape_cast %68 : vector<8x1xi32> to vector<8xi32>
    %70 = vector.shape_cast %69 : vector<8xi32> to vector<8x1xi32>
    %71 = vector.broadcast %70 : vector<8x1xi32> to vector<8x342xi32>
    %72 = arith.cmpi eq, %2, %71 : vector<8x342xi32>
    %73 = arith.extui %72 : vector<8x342xi1> to vector<8x342xi32>
    %74 = arith.sitofp %73 : vector<8x342xi32> to vector<8x342xf32>
    %75 = arith.addf %67, %74 : vector<8x342xf32>
    %76 = vector.extract_strided_slice %0 {offsets = [0, 9], sizes = [8, 1], strides = [1, 1]} : vector<8x19xi32> to vector<8x1xi32>
    %77 = vector.shape_cast %76 : vector<8x1xi32> to vector<8xi32>
    %78 = vector.shape_cast %77 : vector<8xi32> to vector<8x1xi32>
    %79 = vector.broadcast %78 : vector<8x1xi32> to vector<8x342xi32>
    %80 = arith.cmpi eq, %2, %79 : vector<8x342xi32>
    %81 = arith.extui %80 : vector<8x342xi1> to vector<8x342xi32>
    %82 = arith.sitofp %81 : vector<8x342xi32> to vector<8x342xf32>
    %83 = arith.addf %75, %82 : vector<8x342xf32>
    %84 = vector.extract_strided_slice %0 {offsets = [0, 10], sizes = [8, 1], strides = [1, 1]} : vector<8x19xi32> to vector<8x1xi32>
    %85 = vector.shape_cast %84 : vector<8x1xi32> to vector<8xi32>
    %86 = vector.shape_cast %85 : vector<8xi32> to vector<8x1xi32>
    %87 = vector.broadcast %86 : vector<8x1xi32> to vector<8x342xi32>
    %88 = arith.cmpi eq, %2, %87 : vector<8x342xi32>
    %89 = arith.extui %88 : vector<8x342xi1> to vector<8x342xi32>
    %90 = arith.sitofp %89 : vector<8x342xi32> to vector<8x342xf32>
    %91 = arith.addf %83, %90 : vector<8x342xf32>
    %92 = vector.extract_strided_slice %0 {offsets = [0, 11], sizes = [8, 1], strides = [1, 1]} : vector<8x19xi32> to vector<8x1xi32>
    %93 = vector.shape_cast %92 : vector<8x1xi32> to vector<8xi32>
    %94 = vector.shape_cast %93 : vector<8xi32> to vector<8x1xi32>
    %95 = vector.broadcast %94 : vector<8x1xi32> to vector<8x342xi32>
    %96 = arith.cmpi eq, %2, %95 : vector<8x342xi32>
    %97 = arith.extui %96 : vector<8x342xi1> to vector<8x342xi32>
    %98 = arith.sitofp %97 : vector<8x342xi32> to vector<8x342xf32>
    %99 = arith.addf %91, %98 : vector<8x342xf32>
    %100 = vector.extract_strided_slice %0 {offsets = [0, 12], sizes = [8, 1], strides = [1, 1]} : vector<8x19xi32> to vector<8x1xi32>
    %101 = vector.shape_cast %100 : vector<8x1xi32> to vector<8xi32>
    %102 = vector.shape_cast %101 : vector<8xi32> to vector<8x1xi32>
    %103 = vector.broadcast %102 : vector<8x1xi32> to vector<8x342xi32>
    %104 = arith.cmpi eq, %2, %103 : vector<8x342xi32>
    %105 = arith.extui %104 : vector<8x342xi1> to vector<8x342xi32>
    %106 = arith.sitofp %105 : vector<8x342xi32> to vector<8x342xf32>
    %107 = arith.addf %99, %106 : vector<8x342xf32>
    %108 = vector.extract_strided_slice %0 {offsets = [0, 13], sizes = [8, 1], strides = [1, 1]} : vector<8x19xi32> to vector<8x1xi32>
    %109 = vector.shape_cast %108 : vector<8x1xi32> to vector<8xi32>
    %110 = vector.shape_cast %109 : vector<8xi32> to vector<8x1xi32>
    %111 = vector.broadcast %110 : vector<8x1xi32> to vector<8x342xi32>
    %112 = arith.cmpi eq, %2, %111 : vector<8x342xi32>
    %113 = arith.extui %112 : vector<8x342xi1> to vector<8x342xi32>
    %114 = arith.sitofp %113 : vector<8x342xi32> to vector<8x342xf32>
    %115 = arith.addf %107, %114 : vector<8x342xf32>
    %116 = vector.extract_strided_slice %0 {offsets = [0, 14], sizes = [8, 1], strides = [1, 1]} : vector<8x19xi32> to vector<8x1xi32>
    %117 = vector.shape_cast %116 : vector<8x1xi32> to vector<8xi32>
    %118 = vector.shape_cast %117 : vector<8xi32> to vector<8x1xi32>
    %119 = vector.broadcast %118 : vector<8x1xi32> to vector<8x342xi32>
    %120 = arith.cmpi eq, %2, %119 : vector<8x342xi32>
    %121 = arith.extui %120 : vector<8x342xi1> to vector<8x342xi32>
    %122 = arith.sitofp %121 : vector<8x342xi32> to vector<8x342xf32>
    %123 = arith.addf %115, %122 : vector<8x342xf32>
    %124 = vector.extract_strided_slice %0 {offsets = [0, 15], sizes = [8, 1], strides = [1, 1]} : vector<8x19xi32> to vector<8x1xi32>
    %125 = vector.shape_cast %124 : vector<8x1xi32> to vector<8xi32>
    %126 = vector.shape_cast %125 : vector<8xi32> to vector<8x1xi32>
    %127 = vector.broadcast %126 : vector<8x1xi32> to vector<8x342xi32>
    %128 = arith.cmpi eq, %2, %127 : vector<8x342xi32>
    %129 = arith.extui %128 : vector<8x342xi1> to vector<8x342xi32>
    %130 = arith.sitofp %129 : vector<8x342xi32> to vector<8x342xf32>
    %131 = arith.addf %123, %130 : vector<8x342xf32>
    %132 = vector.extract_strided_slice %0 {offsets = [0, 16], sizes = [8, 1], strides = [1, 1]} : vector<8x19xi32> to vector<8x1xi32>
    %133 = vector.shape_cast %132 : vector<8x1xi32> to vector<8xi32>
    %134 = vector.shape_cast %133 : vector<8xi32> to vector<8x1xi32>
    %135 = vector.broadcast %134 : vector<8x1xi32> to vector<8x342xi32>
    %136 = arith.cmpi eq, %2, %135 : vector<8x342xi32>
    %137 = arith.extui %136 : vector<8x342xi1> to vector<8x342xi32>
    %138 = arith.sitofp %137 : vector<8x342xi32> to vector<8x342xf32>
    %139 = arith.addf %131, %138 : vector<8x342xf32>
    %140 = vector.extract_strided_slice %0 {offsets = [0, 17], sizes = [8, 1], strides = [1, 1]} : vector<8x19xi32> to vector<8x1xi32>
    %141 = vector.shape_cast %140 : vector<8x1xi32> to vector<8xi32>
    %142 = vector.shape_cast %141 : vector<8xi32> to vector<8x1xi32>
    %143 = vector.broadcast %142 : vector<8x1xi32> to vector<8x342xi32>
    %144 = arith.cmpi eq, %2, %143 : vector<8x342xi32>
    %145 = arith.extui %144 : vector<8x342xi1> to vector<8x342xi32>
    %146 = arith.sitofp %145 : vector<8x342xi32> to vector<8x342xf32>
    %147 = arith.addf %139, %146 : vector<8x342xf32>
    %148 = vector.extract_strided_slice %0 {offsets = [0, 18], sizes = [8, 1], strides = [1, 1]} : vector<8x19xi32> to vector<8x1xi32>
    %149 = vector.shape_cast %148 : vector<8x1xi32> to vector<8xi32>
    %150 = vector.shape_cast %149 : vector<8xi32> to vector<8x1xi32>
    %151 = vector.broadcast %150 : vector<8x1xi32> to vector<8x342xi32>
    %152 = arith.cmpi eq, %2, %151 : vector<8x342xi32>
    %153 = arith.extui %152 : vector<8x342xi1> to vector<8x342xi32>
    %154 = arith.sitofp %153 : vector<8x342xi32> to vector<8x342xf32>
    %155 = arith.addf %147, %154 : vector<8x342xf32>
    %c0_3 = arith.constant 0 : index
    %c0_4 = arith.constant 0 : index
    %156 = vector.load %arg4[%c0_3, %c0_4] : memref<342x135xf32, #tpu.memory_space<vmem>>, vector<342x135xf32>
    %cst_5 = arith.constant dense<0.000000e+00> : vector<8x135xf32>
    %157 = tpu.matmul %155, %156, %cst_5 {dimension_numbers = #tpu.dot_dimension_numbers<[1], [0], [0], [1], [0, 0, 1, 1], [], []>} : vector<8x342xf32>, vector<342x135xf32>, vector<8x135xf32> -> vector<8x135xf32>
    %c0_6 = arith.constant 0 : index
    %c0_7 = arith.constant 0 : index
    %158 = vector.load %arg5[%c0_6, %c0_7] : memref<4x135xf32, #tpu.memory_space<vmem>>, vector<4x135xf32>
    %cst_8 = arith.constant dense<0.000000e+00> : vector<8x135xf32>
    %159 = tpu.matmul %1, %158, %cst_8 {dimension_numbers = #tpu.dot_dimension_numbers<[1], [0], [0], [1], [0, 0, 1, 1], [], []>} : vector<8x4xf32>, vector<4x135xf32>, vector<8x135xf32> -> vector<8x135xf32>
    %160 = arith.addf %157, %159 : vector<8x135xf32>
    %c0_9 = arith.constant 0 : index
    %c0_10 = arith.constant 0 : index
    %161 = vector.load %arg6[%c0_9, %c0_10] : memref<1x135xf32, #tpu.memory_space<vmem>>, vector<1x135xf32>
    %162 = vector.broadcast %161 : vector<1x135xf32> to vector<8x135xf32>
    %163 = arith.addf %160, %162 : vector<8x135xf32>
    %164 = vector.extract_strided_slice %163 {offsets = [0, 0], sizes = [8, 128], strides = [1, 1]} : vector<8x135xf32> to vector<8x128xf32>
    %cst_11 = arith.constant 0.000000e+00 : f32
    %165 = vector.broadcast %cst_11 : f32 to vector<8x128xf32>
    %166 = arith.maximumf %164, %165 : vector<8x128xf32>
    %167 = vector.extract_strided_slice %163 {offsets = [0, 128], sizes = [8, 7], strides = [1, 1]} : vector<8x135xf32> to vector<8x7xf32>
    %c0_12 = arith.constant 0 : index
    %c0_13 = arith.constant 0 : index
    %168 = vector.load %arg7[%c0_12, %c0_13] : memref<128x64xf32, #tpu.memory_space<vmem>>, vector<128x64xf32>
    %cst_14 = arith.constant dense<0.000000e+00> : vector<8x64xf32>
    %169 = tpu.matmul %166, %168, %cst_14 {dimension_numbers = #tpu.dot_dimension_numbers<[1], [0], [0], [1], [0, 0, 1, 1], [], []>} : vector<8x128xf32>, vector<128x64xf32>, vector<8x64xf32> -> vector<8x64xf32>
    %c0_15 = arith.constant 0 : index
    %c0_16 = arith.constant 0 : index
    %170 = vector.load %arg8[%c0_15, %c0_16] : memref<1x64xf32, #tpu.memory_space<vmem>>, vector<1x64xf32>
    %171 = vector.broadcast %170 : vector<1x64xf32> to vector<8x64xf32>
    %172 = arith.addf %169, %171 : vector<8x64xf32>
    %cst_17 = arith.constant 0.000000e+00 : f32
    %173 = vector.broadcast %cst_17 : f32 to vector<8x64xf32>
    %174 = arith.maximumf %172, %173 : vector<8x64xf32>
    %c0_18 = arith.constant 0 : index
    %c0_19 = arith.constant 0 : index
    %175 = vector.load %arg9[%c0_18, %c0_19] : memref<64x8xf32, #tpu.memory_space<vmem>>, vector<64x8xf32>
    %cst_20 = arith.constant dense<0.000000e+00> : vector<8x8xf32>
    %176 = tpu.matmul %174, %175, %cst_20 {dimension_numbers = #tpu.dot_dimension_numbers<[1], [0], [0], [1], [0, 0, 1, 1], [], []>} : vector<8x64xf32>, vector<64x8xf32>, vector<8x8xf32> -> vector<8x8xf32>
    %c0_21 = arith.constant 0 : index
    %c0_22 = arith.constant 0 : index
    %177 = vector.load %arg10[%c0_21, %c0_22] : memref<1x8xf32, #tpu.memory_space<vmem>>, vector<1x8xf32>
    %178 = vector.broadcast %177 : vector<1x8xf32> to vector<8x8xf32>
    %179 = arith.addf %176, %178 : vector<8x8xf32>
    %180 = vector.extract_strided_slice %179 {offsets = [0, 0], sizes = [8, 1], strides = [1, 1]} : vector<8x8xf32> to vector<8x1xf32>
    %cst_23 = arith.constant 0.000000e+00 : f32
    %181 = vector.broadcast %cst_23 : f32 to vector<8x1xf32>
    %182 = arith.subf %181, %180 : vector<8x1xf32>
    %183 = math.exp %182 : vector<8x1xf32>
    %cst_24 = arith.constant 1.000000e+00 : f32
    %184 = vector.broadcast %cst_24 : f32 to vector<8x1xf32>
    %185 = arith.addf %184, %183 : vector<8x1xf32>
    %cst_25 = arith.constant 1.000000e+00 : f32
    %186 = vector.broadcast %cst_25 : f32 to vector<8x1xf32>
    %187 = arith.divf %186, %185 : vector<8x1xf32>
    %188 = vector.extract_strided_slice %179 {offsets = [0, 1], sizes = [8, 7], strides = [1, 1]} : vector<8x8xf32> to vector<8x7xf32>
    %189 = arith.addf %188, %167 : vector<8x7xf32>
    %c0_26 = arith.constant 0 : index
    %c0_27 = arith.constant 0 : index
    %190 = vector.load %arg3[%c0_26, %c0_27] : memref<8x1xi32, #tpu.memory_space<vmem>>, vector<8x1xi32>
    %191 = tpu.iota {dimensions = array<i32: 1>} : vector<8x7xi32>
    %192 = vector.broadcast %190 : vector<8x1xi32> to vector<8x7xi32>
    %193 = arith.cmpi eq, %191, %192 : vector<8x7xi32>
    %194 = arith.extui %193 : vector<8x7xi1> to vector<8x7xi32>
    %195 = arith.sitofp %194 : vector<8x7xi32> to vector<8x7xf32>
    %c1_i32 = arith.constant 1 : i32
    %196 = vector.broadcast %c1_i32 : i32 to vector<8x1xi32>
    %197 = arith.subi %190, %196 : vector<8x1xi32>
    %c0_i32 = arith.constant 0 : i32
    %198 = vector.broadcast %c0_i32 : i32 to vector<8x1xi32>
    %199 = arith.maxsi %197, %198 : vector<8x1xi32>
    %200 = vector.broadcast %199 : vector<8x1xi32> to vector<8x7xi32>
    %201 = arith.cmpi eq, %191, %200 : vector<8x7xi32>
    %202 = arith.extui %201 : vector<8x7xi1> to vector<8x7xi32>
    %203 = arith.sitofp %202 : vector<8x7xi32> to vector<8x7xf32>
    %204 = arith.addf %195, %203 : vector<8x7xf32>
    %c1_i32_28 = arith.constant 1 : i32
    %205 = vector.broadcast %c1_i32_28 : i32 to vector<8x1xi32>
    %206 = arith.addi %190, %205 : vector<8x1xi32>
    %c6_i32 = arith.constant 6 : i32
    %207 = vector.broadcast %c6_i32 : i32 to vector<8x1xi32>
    %208 = arith.minsi %206, %207 : vector<8x1xi32>
    %209 = vector.broadcast %208 : vector<8x1xi32> to vector<8x7xi32>
    %210 = arith.cmpi eq, %191, %209 : vector<8x7xi32>
    %211 = arith.extui %210 : vector<8x7xi1> to vector<8x7xi32>
    %212 = arith.sitofp %211 : vector<8x7xi32> to vector<8x7xf32>
    %213 = arith.addf %204, %212 : vector<8x7xf32>
    %214 = arith.mulf %189, %213 : vector<8x7xf32>
    %cst_29 = arith.constant dense<0.000000e+00> : vector<8xf32>
    %215 = vector.multi_reduction <add>, %214, %cst_29 [1] : vector<8x7xf32> to vector<8xf32>
    %216 = vector.shape_cast %215 : vector<8xf32> to vector<8x1xf32>
    %cst_30 = arith.constant 0.333333343 : f32
    %217 = vector.broadcast %cst_30 : f32 to vector<8x1xf32>
    %218 = arith.mulf %216, %217 : vector<8x1xf32>
    %cst_31 = arith.constant 0.000000e+00 : f32
    %219 = vector.broadcast %cst_31 : f32 to vector<8x1xf32>
    %220 = arith.subf %219, %218 : vector<8x1xf32>
    %221 = math.exp %220 : vector<8x1xf32>
    %cst_32 = arith.constant 1.000000e+00 : f32
    %222 = vector.broadcast %cst_32 : f32 to vector<8x1xf32>
    %223 = arith.addf %222, %221 : vector<8x1xf32>
    %cst_33 = arith.constant 1.000000e+00 : f32
    %224 = vector.broadcast %cst_33 : f32 to vector<8x1xf32>
    %225 = arith.divf %224, %223 : vector<8x1xf32>
    %226 = tpu.concatenate %187, %225, %189 in 1 : vector<8x1xf32>, vector<8x1xf32>, vector<8x7xf32> -> vector<8x9xf32>
    %c0_34 = arith.constant 0 : index
    %c0_35 = arith.constant 0 : index
    %227 = vector.load %arg11[%c0_34, %c0_35] : memref<8x9xf32, #tpu.memory_space<vmem>>, vector<8x9xf32>
    tpu.vector_store %arg11[%c0_34, %c0_35], %226 {strides = array<i32>} : memref<8x9xf32, #tpu.memory_space<vmem>>, vector<8x9xf32>,
    return
  }
  func.func @transform_0(%arg0: i32) -> (i32, i32) {
    %c0_i32 = arith.constant 0 : i32
    %c0_i32_0 = arith.constant 0 : i32
    return %arg0, %c0_i32 : i32, i32
  }
  func.func @transform_1(%arg0: i32) -> (i32, i32) {
    %c0_i32 = arith.constant 0 : i32
    %c0_i32_0 = arith.constant 0 : i32
    return %arg0, %c0_i32 : i32, i32
  }
  func.func @transform_2(%arg0: i32) -> (i32, i32) {
    %c0_i32 = arith.constant 0 : i32
    %c0_i32_0 = arith.constant 0 : i32
    return %arg0, %c0_i32 : i32, i32
  }
  func.func @transform_3(%arg0: i32) -> (i32, i32) {
    %c0_i32 = arith.constant 0 : i32
    %c0_i32_0 = arith.constant 0 : i32
    %c0_i32_1 = arith.constant 0 : i32
    return %c0_i32, %c0_i32_0 : i32, i32
  }
  func.func @transform_4(%arg0: i32) -> (i32, i32) {
    %c0_i32 = arith.constant 0 : i32
    %c0_i32_0 = arith.constant 0 : i32
    %c0_i32_1 = arith.constant 0 : i32
    return %c0_i32, %c0_i32_0 : i32, i32
  }
  func.func @transform_5(%arg0: i32) -> (i32, i32) {
    %c0_i32 = arith.constant 0 : i32
    %c0_i32_0 = arith.constant 0 : i32
    %c0_i32_1 = arith.constant 0 : i32
    return %c0_i32, %c0_i32_0 : i32, i32
  }
  func.func @transform_6(%arg0: i32) -> (i32, i32) {
    %c0_i32 = arith.constant 0 : i32
    %c0_i32_0 = arith.constant 0 : i32
    %c0_i32_1 = arith.constant 0 : i32
    return %c0_i32, %c0_i32_0 : i32, i32
  }
  func.func @transform_7(%arg0: i32) -> (i32, i32) {
    %c0_i32 = arith.constant 0 : i32
    %c0_i32_0 = arith.constant 0 : i32
    %c0_i32_1 = arith.constant 0 : i32
    return %c0_i32, %c0_i32_0 : i32, i32
  }
  func.func @transform_8(%arg0: i32) -> (i32, i32) {
    %c0_i32 = arith.constant 0 : i32
    %c0_i32_0 = arith.constant 0 : i32
    %c0_i32_1 = arith.constant 0 : i32
    return %c0_i32, %c0_i32_0 : i32, i32
  }
  func.func @transform_9(%arg0: i32) -> (i32, i32) {
    %c0_i32 = arith.constant 0 : i32
    %c0_i32_0 = arith.constant 0 : i32
    %c0_i32_1 = arith.constant 0 : i32
    return %c0_i32, %c0_i32_0 : i32, i32
  }
  func.func @transform_10(%arg0: i32) -> (i32, i32) {
    %c0_i32 = arith.constant 0 : i32
    %c0_i32_0 = arith.constant 0 : i32
    return %arg0, %c0_i32 : i32, i32
  }
}

</mosaic_0001>

<bundles_post_ra>
// kernel: ours_forward.1
= control target key start
LH: loop header
LB: loop body
LE: loop exit
PB: predicated region body
PF: predicated region fallthrough
CT: control target
= control target key end

     0   :  { %v1121_v0 = vmov 2   ;;  %v1122_v1 = vmov 0   ;;  %vm419_vm0 = vcmask 1043456   ;;  %v1123_v5 = vmov 3   ;;  %s1143_s29 = smov 127   ;;  %s1747_s0 = inlined_call_operand.vmem [shape: s32[8,19], index: 0, kind: input, shape index: {}]   ;;  %s1748_s4 = inlined_call_operand.vmem [shape: f32[4,135], index: 4, kind: input, shape index: {}]   ;;  %s1749_s1 = inlined_call_operand.vmem [shape: f32[8,4], index: 1, kind: input, shape index: {}]   ;;  %s1750_s3 = inlined_call_operand.vmem [shape: f32[342,135], index: 3, kind: input, shape index: {}]   ;;  %s1751_s2 = inlined_call_operand.vmem [shape: s32[8,1], index: 2, kind: input, shape index: {}]   ;;  %s1752_s6 = inlined_call_operand.vmem [shape: f32[128,64], index: 6, kind: input, shape index: {}]   ;;  %s1753_s5 = inlined_call_operand.vmem [shape: f32[1,135], index: 5, kind: input, shape index: {}]   ;;  %s1754_s8 = inlined_call_operand.vmem [shape: f32[64,8], index: 8, kind: input, shape index: {}]   ;;  %s1755_s7 = inlined_call_operand.vmem [shape: f32[1,64], index: 7, kind: input, shape index: {}]   ;;  %s1756_s9 = inlined_call_operand.vmem [shape: f32[1,8], index: 9, kind: input, shape index: {}]   ;;  %s1757_s10 = inlined_call_operand.vmem [shape: f32[8,9], index: 10, kind: output, shape index: {}]  }
   0x1   :  { %1093 = vset.pattern.permute.xlu1 %v1121_v0  ;;  %1091 = vset.pattern.permute.xlu0 %v1122_v1  ;;  %v1203_v2 = vld [vmem:[%s1747_s0] sm:$0xff]  ;;  %v1124_v6 = vmov 1   ;;  %vm415_vm1 = vcmask 31744   ;;  %v357_v8 = vld [vmem:[%s1750_s3 + $0xf8] sm:$0xff]  ;;  %v1125_v9 = vmov 0.0   ;;  %v356_v10 = vld [vmem:[%s1750_s3 + $0xf0] sm:$0xff] }
   0x2   :  { %v412_v3 = vld [vmem:[%s1748_s4] sm:$0xff]  ;;  %72 = vperm.xlu1 %1093, %v1203_v2   ;;  %42 = vperm.xlu0 %1091, %v1203_v2   ;;  %v1126_v11 = vmov 4   ;;  %v1127_v12 = vmov 5   ;;  %v355_v13 = vld [vmem:[%s1750_s3 + $0xe8] sm:$0xff]  ;;  %v353_v15 = vld [vmem:[%s1750_s3 + $0xd8] sm:$0xff]  ;;  %v1128_v16 = vmov 6  }
   0x3   :  { %v414_v4 = vcombine.high %v412_v3, %v412_v3  ;;  %v36_v7 = vld [vmem:[%s1749_s1] sm:$0xff]  ;;  %488 = vmatprep.mubr.f32.mxu1 %v1125_v9  ;;  %641 = vmatprep.mubr.f32.mxu0 %v1125_v9  ;;  %v1129_v17 = vmov 8   ;;  %v352_v18 = vld [vmem:[%s1750_s3 + $0xd0] sm:$0xff]  ;;  %v351_v19 = vld [vmem:[%s1750_s3 + $0xc8] sm:$0xff]  ;;  %v1130_v21 = vmov 7   ;;  %v1131_v22 = vmov 11  }
   0x4   :  { %v354_v14 = vld [vmem:[%s1750_s3 + $0xe0] sm:$0xff]  ;;  %v349_v23 = vld [vmem:[%s1750_s3 + $0xb8] sm:$0xff]  ;;  %v348_v24 = vld [vmem:[%s1750_s3 + $0xb0] sm:$0xff]  ;;  %v1132_v26 = vmov 9   ;;  %v1133_v27 = vmov 14   ;;  %v1134_v31 = vmov 10  }
   0x5   :  { %975 = vmatprep.subr.msk.mxu1 %vm419_vm0, %v414_v4  ;;  %v350_v20 = vld [vmem:[%s1750_s3 + $0xc0] sm:$0xff]  ;;  %v347_v25 = vld [vmem:[%s1750_s3 + $0xa8] sm:$0xff]  ;;  %v345_v29 = vld [vmem:[%s1750_s3 + $0x98] sm:$0xff]  ;;  %v1135_v32 = vmov 17   ;;  %vm499_vm2 = vcmask 1045504   ;;  %v1136_v39 = vmov 12  }
   0x6   :  { %1094 = vset.pattern.permute.xlu1 %v1123_v5  ;;  %1092 = vset.pattern.permute.xlu0 %v1124_v6  ;;  %v346_v28 = vld [vmem:[%s1750_s3 + $0xa0] sm:$0xff]  ;;  %v344_v30 = vld [vmem:[%s1750_s3 + $0x90] sm:$0xff]  ;;  %v343_v33 = vld [vmem:[%s1750_s3 + $0x88] sm:$0xff]  ;;  %v1137_v48 = vmov 13   ;;  %v1138_v57 = vmov 15   ;;  %v1139_v4 = vmov 16  }
   0x7   :  { %87 = vperm.xlu1 %1094, %v1203_v2   ;;  %57 = vperm.xlu0 %1092, %v1203_v2   ;;  %v342_v34 = vld [vmem:[%s1750_s3 + $0x80] sm:$0xff]  ;;  %v341_v35 = vld [vmem:[%s1750_s3 + $0x78] sm:$0xff]  ;;  %v340_v36 = vld [vmem:[%s1750_s3 + $0x70] sm:$0xff] }
   0x8   :  { %976 = vmatpush1.msk.msra.mxu1 %vm419_vm0, %v412_v3  ;;  %v339_v37 = vld [vmem:[%s1750_s3 + $0x68] sm:$0xff]  ;;  %v338_v40 = vld [vmem:[%s1750_s3 + $0x60] sm:$0xff]  ;;  %v337_v42 = vld [vmem:[%s1750_s3 + $0x58] sm:$0xff] }
   0x9   :  { %977 = vmatmul.mubr.msk.f32.vlgmr.msra.gmra.mxu1 %vm415_vm1, %v36_v7  ;;  %506 = vmatprep.subr.mxu1 %v357_v8  ;;  %v411_v38 = vld [vmem:[%s1750_s3 + $0x2a8] sm:$0x3f]  ;;  %v410_v41 = vld [vmem:[%s1750_s3 + $0x2a0] sm:$0x3f]  ;;  %v409_v43 = vld [vmem:[%s1750_s3 + $0x298] sm:$0xff] }
   0xa   :  { %507 = vmatpush1.msra.mxu1 %v356_v10  ;;  %v336_v44 = vld [vmem:[%s1750_s3 + $0x50] sm:$0xff]  ;;  %978 = vmatprep.subr.msk.mxu0 %vm499_vm2, %v411_v38  ;;  %v335_v45 = vld [vmem:[%s1750_s3 + $0x48] sm:$0xff]  ;;  %v334_v46 = vld [vmem:[%s1750_s3 + $0x40] sm:$0xff] }
   0xb   :  { %1095 = vset.pattern.permute.xlu1 %v1126_v11  ;;  %1096 = vset.pattern.permute.xlu0 %v1127_v12  ;;  %v408_v47 = vld [vmem:[%s1750_s3 + $0x290] sm:$0xff]  ;;  %v333_v49 = vld [vmem:[%s1750_s3 + $0x38] sm:$0xff]  ;;  %v407_v50 = vld [vmem:[%s1750_s3 + $0x288] sm:$0xff] }
   0xc   :  { %102 = vperm.xlu1 %1095, %v1203_v2   ;;  %117 = vperm.xlu0 %1096, %v1203_v2   ;;  %v332_v51 = vld [vmem:[%s1750_s3 + $0x30] sm:$0xff]  ;;  %v406_v52 = vld [vmem:[%s1750_s3 + $0x280] sm:$0xff]  ;;  %v331_v53 = vld [vmem:[%s1750_s3 + $0x28] sm:$0xff] }
   0xd   :  { %508 = vmatprep.subr.mxu1 %v355_v13  ;;  %979 = vmatpush1.msk.msra.mxu0 %vm499_vm2, %v410_v41  ;;  %v330_v54 = vld [vmem:[%s1750_s3 + $0x20] sm:$0xff]  ;;  %v329_v55 = vld [vmem:[%s1750_s3 + $0x18] sm:$0xff]  ;;  %v328_v58 = vld [vmem:[%s1750_s3 + $0x10] sm:$0xff] }
   0xe   :  { %509 = vmatpush1.msra.mxu1 %v354_v14  ;;  %589 = vmatprep.subr.mxu0 %v409_v43  ;;  %v405_v56 = vld [vmem:[%s1750_s3 + $0x278] sm:$0xff]  ;;  %v404_v59 = vld [vmem:[%s1750_s3 + $0x270] sm:$0xff]  ;;  %v327_v60 = vld [vmem:[%s1750_s3 + $0x8] sm:$0xff]  ;;  %v1140_v14 = vmov 18  }
   0xf   :  { %510 = vmatprep.subr.mxu1 %v353_v15  ;;  %590 = vmatpush1.msra.mxu0 %v408_v47  ;;  %v403_v61 = vld [vmem:[%s1750_s3 + $0x268] sm:$0xff]  ;;  %v326_v62 = vld [vmem:[%s1750_s3] sm:$0xff]  ;;  %v389_v63 = vld [vmem:[%s1750_s3 + $0x1f8] sm:$0xff] }
  0x10   :  { %1097 = vset.pattern.permute.xlu1 %v1128_v16  ;;  %1099 = vset.pattern.permute.xlu0 %v1129_v17  ;;  %v388_v0 = vld [vmem:[%s1750_s3 + $0x1f0] sm:$0xff]  ;;  %v402_v3 = vld [vmem:[%s1750_s3 + $0x260] sm:$0xff]  ;;  %v387_v5 = vld [vmem:[%s1750_s3 + $0x1e8] sm:$0xff] }
  0x11   :  { %132 = vperm.xlu1 %1097, %v1203_v2   ;;  %162 = vperm.xlu0 %1099, %v1203_v2   ;;  %v401_v6 = vld [vmem:[%s1750_s3 + $0x258] sm:$0xff]  ;;  %v386_v7 = vld [vmem:[%s1750_s3 + $0x1e0] sm:$0xff]  ;;  %v400_v8 = vld [vmem:[%s1750_s3 + $0x250] sm:$0xff] }
  0x12   :  { %511 = vmatpush1.msra.mxu1 %v352_v18  ;;  %591 = vmatprep.subr.mxu0 %v407_v50  ;;  %v385_v10 = vld [vmem:[%s1750_s3 + $0x1d8] sm:$0xff]  ;;  %v384_v11 = vld [vmem:[%s1750_s3 + $0x1d0] sm:$0xff]  ;;  %v383_v12 = vld [vmem:[%s1750_s3 + $0x1c8] sm:$0xff]  ;;  %v37_v50 = vlaneseq }
  0x13   :  { %512 = vmatprep.subr.mxu1 %v351_v19  ;;  %592 = vmatpush1.msra.mxu0 %v406_v52  ;;  %v399_v13 = vld [vmem:[%s1750_s3 + $0x248] sm:$0xff]  ;;  %v382_v15 = vld [vmem:[%s1750_s3 + $0x1c0] sm:$0xff]  ;;  %v381_v17 = vld [vmem:[%s1750_s3 + $0x1b8] sm:$0xff] }
  0x14   :  { %513 = vmatpush1.msra.mxu1 %v350_v20  ;;  %593 = vmatprep.subr.mxu0 %v405_v56  ;;  %v398_v16 = vld [vmem:[%s1750_s3 + $0x240] sm:$0xff]  ;;  %v397_v18 = vld [vmem:[%s1750_s3 + $0x238] sm:$0xff]  ;;  %v380_v19 = vld [vmem:[%s1750_s3 + $0x1b0] sm:$0xff] }
  0x15   :  { %1098 = vset.pattern.permute.xlu1 %v1130_v21  ;;  %1102 = vset.pattern.permute.xlu0 %v1131_v22  ;;  %v396_v20 = vld [vmem:[%s1750_s3 + $0x230] sm:$0xff]  ;;  %v395_v21 = vld [vmem:[%s1750_s3 + $0x228] sm:$0xff]  ;;  %v378_v22 = vld [vmem:[%s1750_s3 + $0x1a0] sm:$0xff] }
  0x16   :  { %147 = vperm.xlu1 %1098, %v1203_v2   ;;  %207 = vperm.xlu0 %1102, %v1203_v2   ;;  %v367_v38 = vld [vmem:[%s1750_s3 + $0x148] sm:$0xff]  ;;  %v361_v43 = vld [vmem:[%s1750_s3 + $0x118] sm:$0xff]  ;;  %v358_v47 = vld [vmem:[%s1750_s3 + $0x100] sm:$0xff] }
  0x17   :  { %514 = vmatprep.subr.mxu1 %v349_v23  ;;  %594 = vmatpush1.msra.mxu0 %v404_v59  ;;  %v394_v23 = vld [vmem:[%s1750_s3 + $0x220] sm:$0xff]  ;;  %v363_v41 = vld [vmem:[%s1750_s3 + $0x128] sm:$0xff] }
  0x18   :  { %515 = vmatpush1.msra.mxu1 %v348_v24  ;;  %595 = vmatprep.subr.mxu0 %v403_v61  ;;  %v377_v24 = vld [vmem:[%s1750_s3 + $0x198] sm:$0xff] }
  0x19   :  { %516 = vmatprep.subr.mxu1 %v347_v25  ;;  %596 = vmatpush1.msra.mxu0 %v402_v3  ;;  %v393_v25 = vld [vmem:[%s1750_s3 + $0x218] sm:$0xff] }
  0x1a   :  { %1100 = vset.pattern.permute.xlu1 %v1132_v26  ;;  %1105 = vset.pattern.permute.xlu0 %v1133_v27  ;;  %v376_v26 = vld [vmem:[%s1750_s3 + $0x190] sm:$0xff] }
  0x1b   :  { %177 = vperm.xlu1 %1100, %v1203_v2   ;;  %252 = vperm.xlu0 %1105, %v1203_v2   ;;  %v392_v27 = vld [vmem:[%s1750_s3 + $0x210] sm:$0xff] }
  0x1c   :  { %517 = vmatpush1.msra.mxu1 %v346_v28  ;;  %597 = vmatprep.subr.mxu0 %v401_v6  ;;  %v375_v28 = vld [vmem:[%s1750_s3 + $0x188] sm:$0xff] }
  0x1d   :  { %518 = vmatprep.subr.mxu1 %v345_v29  ;;  %598 = vmatpush1.msra.mxu0 %v400_v8  ;;  %v391_v29 = vld [vmem:[%s1750_s3 + $0x208] sm:$0xff] }
  0x1e   :  { %519 = vmatpush1.msra.mxu1 %v344_v30  ;;  %599 = vmatprep.subr.mxu0 %v399_v13  ;;  %v374_v30 = vld [vmem:[%s1750_s3 + $0x180] sm:$0xff] }
  0x1f   :  { %1101 = vset.pattern.permute.xlu1 %v1134_v31  ;;  %1108 = vset.pattern.permute.xlu0 %v1135_v32  ;;  %v390_v31 = vld [vmem:[%s1750_s3 + $0x200] sm:$0xff]  ;;  %v373_v32 = vld [vmem:[%s1750_s3 + $0x178] sm:$0xff] }
  0x20   :  { %192 = vperm.xlu1 %1101, %v1203_v2   ;;  %297 = vperm.xlu0 %1108, %v1203_v2  }
  0x21   :  { %520 = vmatprep.subr.mxu1 %v343_v33  ;;  %600 = vmatpush1.msra.mxu0 %v398_v16  ;;  %v372_v33 = vld [vmem:[%s1750_s3 + $0x170] sm:$0xff] }
  0x22   :  { %521 = vmatpush1.msra.mxu1 %v342_v34  ;;  %601 = vmatprep.subr.mxu0 %v397_v18  ;;  %v371_v34 = vld [vmem:[%s1750_s3 + $0x168] sm:$0xff] }
  0x23   :  { %522 = vmatprep.subr.mxu1 %v341_v35  ;;  %602 = vmatpush1.msra.mxu0 %v396_v20  ;;  %v370_v35 = vld [vmem:[%s1750_s3 + $0x160] sm:$0xff] }
  0x24   :  { %1103 = vset.pattern.permute.xlu1 %v1136_v39  ;;  %523 = vmatpush1.msra.mxu1 %v340_v36  ;;  %v369_v36 = vld [vmem:[%s1750_s3 + $0x158] sm:$0xff]  ;;  %v366_v39 = vld [vmem:[%s1750_s3 + $0x140] sm:$0xff] }
  0x25   :  { %222 = vperm.xlu1 %1103, %v1203_v2   ;;  %524 = vmatprep.subr.mxu1 %v339_v37  ;;  %v368_v37 = vld [vmem:[%s1750_s3 + $0x150] sm:$0xff] }
  0x26   :  { %525 = vmatpush1.msra.mxu1 %v338_v40  ;;  %603 = vmatprep.subr.mxu0 %v395_v21  ;;  %v365_v40 = vld [vmem:[%s1750_s3 + $0x138] sm:$0xff] }
  0x27   :  { %526 = vmatprep.subr.mxu1 %v337_v42  ;;  %604 = vmatpush1.msra.mxu0 %v394_v23  ;;  %v362_v42 = vld [vmem:[%s1750_s3 + $0x120] sm:$0xff] }
  0x28   :  { %527 = vmatpush1.msra.mxu1 %v336_v44  ;;  %605 = vmatprep.subr.mxu0 %v393_v25  ;;  %v360_v44 = vld [vmem:[%s1750_s3 + $0x110] sm:$0xff] }
  0x29   :  { %1104 = vset.pattern.permute.xlu1 %v1137_v48  ;;  %528 = vmatprep.subr.mxu1 %v335_v45  ;;  %v359_v45 = vld [vmem:[%s1750_s3 + $0x108] sm:$0xff] }
  0x2a   :  { %237 = vperm.xlu1 %1104, %v1203_v2   ;;  %529 = vmatpush1.msra.mxu1 %v334_v46  ;;  %v1493_v46 = vld [vmem:[%s1751_s2] sm:$0xff] }
  0x2b   :  { %530 = vmatprep.subr.mxu1 %v333_v49  ;;  %606 = vmatpush1.msra.mxu0 %v392_v27  ;;  %v874_v48 = vadd.s32 1, %v1493_v46 }
  0x2c   :  { %531 = vmatpush1.msra.mxu1 %v332_v51  ;;  %607 = vmatprep.subr.mxu0 %v391_v29  ;;  %v1501_v51 = vand.u32 127, %v37_v50 }
  0x2d   :  { %532 = vmatprep.subr.mxu1 %v331_v53  ;;  %608 = vmatpush1.msra.mxu0 %v390_v31  ;;  %vm875_vm3 = vcmp.lt.s32.totalorder %v874_v48, 6 }
  0x2e   :  { %1106 = vset.pattern.permute.xlu1 %v1138_v57  ;;  %533 = vmatpush1.msra.mxu1 %v330_v54  ;;  %v876_v49 = vsel %vm875_vm3, %v874_v48, 6  ;;  %v1504_v54 = vadd.s32 128, %v1501_v51 }
  0x2f   :  { %267 = vperm.xlu1 %1106, %v1203_v2   ;;  %534 = vmatprep.subr.mxu1 %v329_v55  ;;  %v1507_v55 = vadd.s32 256, %v1501_v51 }
  0x30   :  { %535 = vmatpush1.msra.mxu1 %v328_v58  ;;  %1014 = vmatprep.subr.mxu0 %v1125_v9 }
  0x31   :  { %536 = vmatprep.subr.mxu1 %v327_v60  ;;  %1111 = vset.pattern.permute.xlu0 %v1122_v1 }
  0x32   :  { %537 = vmatpush1.msra.mxu1 %v326_v62 }
  0x33   :  { %1107 = vset.pattern.permute.xlu1 %v1139_v4  ;;  %538 = vmatprep.subr.mxu1 %v389_v63 }
  0x34   :  { %282 = vperm.xlu1 %1107, %v1203_v2   ;;  %539 = vmatpush2.msra.mxu1 %v388_v0 }
  0x35   :  { %540 = vmatprep.subr.mxu1 %v387_v5 }
  0x36   :  { %541 = vmatpush2.msra.mxu1 %v386_v7 }
  0x37   :  { %542 = vmatprep.subr.mxu1 %v385_v10 }
  0x38   :  { %1109 = vset.pattern.permute.xlu1 %v1140_v14  ;;  %543 = vmatpush2.msra.mxu1 %v384_v11 }
  0x39   :  { %312 = vperm.xlu1 %1109, %v1203_v2   ;;  %544 = vmatprep.subr.mxu1 %v383_v12  ;;  %v379_v2 = vld [vmem:[%s1750_s3 + $0x1a8] sm:$0xff] }
  0x3a   :  { %545 = vmatpush2.msra.mxu1 %v382_v15 }
  0x3b   :  { %546 = vmatprep.subr.mxu1 %v381_v17 }
  0x3c   :  { %547 = vmatpush2.msra.mxu1 %v380_v19 }
  0x3d   :  { %548 = vmatprep.subr.mxu1 %v379_v2  ;;  %1110 = vset.pattern.permute.xlu1 %v1122_v1  ;;  %v364_v1 = vld [vmem:[%s1750_s3 + $0x130] sm:$0xff] }
  0x3e   :  { %549 = vmatpush2.msra.mxu1 %v378_v22  ;;  %859 = vperm.xlu1 %1110, %v1493_v46  }
  0x3f   :  { %550 = vmatprep.subr.mxu1 %v377_v24 }
  0x40   :  { %551 = vmatpush2.msra.mxu1 %v376_v26 }
  0x41   :  { %552 = vmatprep.subr.mxu1 %v375_v28 }
  0x42   :  { %553 = vmatpush2.msra.mxu1 %v374_v30  ;;  %878 = vperm.xlu1 %1110, %v876_v49  }
  0x43   :  { %554 = vmatprep.subr.mxu1 %v373_v32 }
  0x44   :  { %555 = vmatpush2.msra.mxu1 %v372_v33 }
  0x45   :  { %556 = vmatprep.subr.mxu1 %v371_v34 }
  0x46   :  { %557 = vmatpush2.msra.mxu1 %v370_v35 }
  0x47   :  { %558 = vmatprep.subr.mxu1 %v369_v36 }
  0x48   :  { %559 = vmatpush2.msra.mxu1 %v368_v37 }
  0x49   :  { %560 = vmatprep.subr.mxu1 %v367_v38 }
  0x4a   :  { %561 = vmatpush2.msra.mxu1 %v366_v39 }
  0x4b   :  { %562 = vmatprep.subr.mxu1 %v365_v40 }
  0x4c   :  { %563 = vmatpush2.msra.mxu1 %v364_v1 }
  0x4d   :  { %564 = vmatprep.subr.mxu1 %v363_v41 }
  0x4e   :  { %565 = vmatpush2.msra.mxu1 %v362_v42 }
  0x4f   :  { %566 = vmatprep.subr.mxu1 %v361_v43 }
  0x50   :  { %567 = vmatpush2.msra.mxu1 %v360_v44 }
  0x51   :  { %568 = vmatprep.subr.mxu1 %v359_v45 }
  0x52   :  { %569 = vmatpush2.msra.mxu1 %v358_v47 }
  0x7d   :  { %v73_v52 = vpop.permute.xlu1 %72  ;;  %v43_v53 = vpop.permute.xlu0 %42 }
  0x7e   :  { %vm74_vm4 = vcmp.eq.s32.totalorder %v1501_v51, %v73_v52  ;;  %vm44_vm5 = vcmp.eq.s32.totalorder %v1501_v51, %v43_v53  ;;  %vm45_vm6 = vcmp.eq.s32.totalorder %v1504_v54, %v43_v53  ;;  %vm46_vm7 = vcmp.eq.s32.totalorder %v1507_v55, %v43_v53 }
  0x7f   :  { %vm75_vm8 = vcmp.eq.s32.totalorder %v1504_v54, %v73_v52  ;;  %vm76_vm9 = vcmp.eq.s32.totalorder %v1507_v55, %v73_v52  ;;  %v924_v56 = vsel %vm74_vm4, 1.0, %v1125_v9  ;;  %v918_v59 = vsel %vm44_vm5, 1.0, %v1125_v9 }
  0x80   :  { %v919_v60 = vsel %vm45_vm6, 1.0, %v1125_v9  ;;  %v920_v61 = vsel %vm46_vm7, 1.0, %v1125_v9  ;;  %v925_v62 = vsel %vm75_vm8, 1.0, %v1125_v9  ;;  %v926_v3 = vsel %vm76_vm9, 1.0, %v1125_v9 }
  0x82   :  { %v88_v57 = vpop.permute.xlu1 %87  ;;  %v58_v58 = vpop.permute.xlu0 %57 }
  0x83   :  { %vm59_vm10 = vcmp.eq.s32.totalorder %v1501_v51, %v58_v58  ;;  %vm89_vm11 = vcmp.eq.s32.totalorder %v1501_v51, %v88_v57  ;;  %vm90_vm12 = vcmp.eq.s32.totalorder %v1504_v54, %v88_v57  ;;  %vm91_vm13 = vcmp.eq.s32.totalorder %v1507_v55, %v88_v57 }
  0x84   :  { %vm60_vm14 = vcmp.eq.s32.totalorder %v1504_v54, %v58_v58  ;;  %vm61_vm15 = vcmp.eq.s32.totalorder %v1507_v55, %v58_v58  ;;  %v921_v63 = vsel %vm59_vm10, 1.0, %v1125_v9  ;;  %v927_v7 = vsel %vm89_vm11, 1.0, %v1125_v9 }
  0x85   :  { %v922_v0 = vsel %vm60_vm14, 1.0, %v1125_v9  ;;  %v923_v4 = vsel %vm61_vm15, 1.0, %v1125_v9  ;;  %v68_v5 = vadd.f32 %v921_v63, %v918_v59  ;;  %v928_v8 = vsel %vm90_vm12, 1.0, %v1125_v9 }
  0x86   :  { %v69_v6 = vadd.f32 %v922_v0, %v919_v60  ;;  %v929_v10 = vsel %vm91_vm13, 1.0, %v1125_v9  ;;  %v70_v11 = vadd.f32 %v923_v4, %v920_v61 }
  0x87   :  { %v103_v12 = vpop.permute.xlu1 %102  ;;  %v118_v13 = vpop.permute.xlu0 %117  ;;  %v83_v14 = vadd.f32 %v924_v56, %v68_v5 }
  0x88   :  { %v84_v15 = vadd.f32 %v925_v62, %v69_v6  ;;  %vm104_vm0 = vcmp.eq.s32.totalorder %v1501_v51, %v103_v12  ;;  %vm105_vm1 = vcmp.eq.s32.totalorder %v1504_v54, %v103_v12  ;;  %v85_v16 = vadd.f32 %v926_v3, %v70_v11 }
  0x89   :  { %vm106_vm2 = vcmp.eq.s32.totalorder %v1507_v55, %v103_v12  ;;  %v930_v17 = vsel %vm104_vm0, 1.0, %v1125_v9  ;;  %v931_v18 = vsel %vm105_vm1, 1.0, %v1125_v9  ;;  %v98_v19 = vadd.f32 %v927_v7, %v83_v14 }
  0x8a   :  { %v99_v20 = vadd.f32 %v928_v8, %v84_v15  ;;  %v932_v2 = vsel %vm106_vm2, 1.0, %v1125_v9  ;;  %vm119_vm3 = vcmp.eq.s32.totalorder %v1501_v51, %v118_v13  ;;  %v100_v21 = vadd.f32 %v929_v10, %v85_v16 }
  0x8b   :  { %vm120_vm4 = vcmp.eq.s32.totalorder %v1504_v54, %v118_v13  ;;  %vm121_vm5 = vcmp.eq.s32.totalorder %v1507_v55, %v118_v13  ;;  %v933_v22 = vsel %vm119_vm3, 1.0, %v1125_v9  ;;  %v113_v23 = vadd.f32 %v930_v17, %v98_v19 }
  0x8c   :  { %v114_v24 = vadd.f32 %v931_v18, %v99_v20  ;;  %v934_v25 = vsel %vm120_vm4, 1.0, %v1125_v9  ;;  %v935_v26 = vsel %vm121_vm5, 1.0, %v1125_v9  ;;  %v133_v27 = vpop.permute.xlu1 %132  ;;  %v115_v28 = vadd.f32 %v932_v2, %v100_v21  ;;  %v163_v29 = vpop.permute.xlu0 %162 }
  0x8d   :  { %vm134_vm6 = vcmp.eq.s32.totalorder %v1501_v51, %v133_v27  ;;  %vm135_vm7 = vcmp.eq.s32.totalorder %v1504_v54, %v133_v27  ;;  %vm136_vm8 = vcmp.eq.s32.totalorder %v1507_v55, %v133_v27  ;;  %v128_v30 = vadd.f32 %v933_v22, %v113_v23 }
  0x8e   :  { %v129_v31 = vadd.f32 %v934_v25, %v114_v24  ;;  %v936_v32 = vsel %vm134_vm6, 1.0, %v1125_v9  ;;  %v937_v33 = vsel %vm135_vm7, 1.0, %v1125_v9  ;;  %v130_v34 = vadd.f32 %v935_v26, %v115_v28 }
  0x8f   :  { %v938_v35 = vsel %vm136_vm8, 1.0, %v1125_v9  ;;  %vm164_vm9 = vcmp.eq.s32.totalorder %v1501_v51, %v163_v29  ;;  %v143_v36 = vadd.f32 %v936_v32, %v128_v30  ;;  %vm165_vm10 = vcmp.eq.s32.totalorder %v1504_v54, %v163_v29 }
  0x90   :  { %v144_v37 = vadd.f32 %v937_v33, %v129_v31  ;;  %vm166_vm11 = vcmp.eq.s32.totalorder %v1507_v55, %v163_v29  ;;  %v145_v39 = vadd.f32 %v938_v35, %v130_v34  ;;  %v942_v42 = vsel %vm164_vm9, 1.0, %v1125_v9 }
  0x91   :  { %v148_v38 = vpop.permute.xlu1 %147  ;;  %v943_v47 = vsel %vm165_vm10, 1.0, %v1125_v9  ;;  %v944_v48 = vsel %vm166_vm11, 1.0, %v1125_v9  ;;  %v208_v56 = vpop.permute.xlu0 %207 }
  0x92   :  { %vm149_vm12 = vcmp.eq.s32.totalorder %v1501_v51, %v148_v38  ;;  %vm150_vm13 = vcmp.eq.s32.totalorder %v1504_v54, %v148_v38  ;;  %vm151_vm14 = vcmp.eq.s32.totalorder %v1507_v55, %v148_v38  ;;  %vm209_vm2 = vcmp.eq.s32.totalorder %v1501_v51, %v208_v56 }
  0x93   :  { %v939_v40 = vsel %vm149_vm12, 1.0, %v1125_v9  ;;  %v940_v1 = vsel %vm150_vm13, 1.0, %v1125_v9  ;;  %v941_v41 = vsel %vm151_vm14, 1.0, %v1125_v9  ;;  %vm210_vm3 = vcmp.eq.s32.totalorder %v1504_v54, %v208_v56 }
  0x94   :  { %v158_v43 = vadd.f32 %v939_v40, %v143_v36  ;;  %v159_v44 = vadd.f32 %v940_v1, %v144_v37  ;;  %v160_v45 = vadd.f32 %v941_v41, %v145_v39  ;;  %vm211_vm4 = vcmp.eq.s32.totalorder %v1507_v55, %v208_v56 }
  0x95   :  { %v951_v6 = vsel %vm209_vm2, 1.0, %v1125_v9  ;;  %v952_v11 = vsel %vm210_vm3, 1.0, %v1125_v9  ;;  %v953_v12 = vsel %vm211_vm4, 1.0, %v1125_v9 }
  0x96   :  { %v173_v49 = vadd.f32 %v942_v42, %v158_v43  ;;  %v178_v52 = vpop.permute.xlu1 %177  ;;  %v174_v53 = vadd.f32 %v943_v47, %v159_v44  ;;  %v175_v57 = vadd.f32 %v944_v48, %v160_v45  ;;  %v253_v16 = vpop.permute.xlu0 %252 }
  0x97   :  { %vm179_vm15 = vcmp.eq.s32.totalorder %v1501_v51, %v178_v52  ;;  %vm180_vm0 = vcmp.eq.s32.totalorder %v1504_v54, %v178_v52  ;;  %vm181_vm1 = vcmp.eq.s32.totalorder %v1507_v55, %v178_v52  ;;  %vm254_vm11 = vcmp.eq.s32.totalorder %v1501_v51, %v253_v16 }
  0x98   :  { %v945_v58 = vsel %vm179_vm15, 1.0, %v1125_v9  ;;  %v946_v59 = vsel %vm180_vm0, 1.0, %v1125_v9  ;;  %v947_v60 = vsel %vm181_vm1, 1.0, %v1125_v9  ;;  %vm255_vm12 = vcmp.eq.s32.totalorder %v1504_v54, %v253_v16 }
  0x99   :  { %v188_v61 = vadd.f32 %v945_v58, %v173_v49  ;;  %v189_v62 = vadd.f32 %v946_v59, %v174_v53  ;;  %v190_v0 = vadd.f32 %v947_v60, %v175_v57  ;;  %vm256_vm13 = vcmp.eq.s32.totalorder %v1507_v55, %v253_v16  ;;  %v667_v16 = vld [vmem:[%s1752_s6 + $0x20] sm:$0xff] }
  0x9a   :  { %v960_v27 = vsel %vm254_vm11, 1.0, %v1125_v9  ;;  %v961_v32 = vsel %vm255_vm12, 1.0, %v1125_v9  ;;  %v962_v33 = vsel %vm256_vm13, 1.0, %v1125_v9  ;;  %vm495_vm13 = vcmask 703488  }
  0x9b   :  { %v193_v63 = vpop.permute.xlu1 %192  ;;  %v298_v28 = vpop.permute.xlu0 %297 }
  0x9c   :  { %vm194_vm5 = vcmp.eq.s32.totalorder %v1501_v51, %v193_v63  ;;  %vm195_vm6 = vcmp.eq.s32.totalorder %v1504_v54, %v193_v63  ;;  %vm196_vm7 = vcmp.eq.s32.totalorder %v1507_v55, %v193_v63  ;;  %vm299_vm1 = vcmp.eq.s32.totalorder %v1501_v51, %v298_v28 }
  0x9d   :  { %v948_v3 = vsel %vm194_vm5, 1.0, %v1125_v9  ;;  %v949_v4 = vsel %vm195_vm6, 1.0, %v1125_v9  ;;  %v950_v5 = vsel %vm196_vm7, 1.0, %v1125_v9  ;;  %vm300_vm5 = vcmp.eq.s32.totalorder %v1504_v54, %v298_v28 }
  0x9e   :  { %v203_v7 = vadd.f32 %v948_v3, %v188_v61  ;;  %v204_v8 = vadd.f32 %v949_v4, %v189_v62  ;;  %v205_v10 = vadd.f32 %v950_v5, %v190_v0  ;;  %vm301_vm6 = vcmp.eq.s32.totalorder %v1507_v55, %v298_v28 }
  0x9f   :  { %v969_v43 = vsel %vm299_vm1, 1.0, %v1125_v9  ;;  %v970_v44 = vsel %vm300_vm5, 1.0, %v1125_v9  ;;  %v971_v52 = vsel %vm301_vm6, 1.0, %v1125_v9  ;;  %vm908_vm5 = vcmask 7168  }
  0xa0   :  { %v218_v13 = vadd.f32 %v951_v6, %v203_v7  ;;  %v223_v14 = vpop.permute.xlu1 %222  ;;  %v219_v15 = vadd.f32 %v952_v11, %v204_v8  ;;  %v220_v17 = vadd.f32 %v953_v12, %v205_v10  ;;  %v678_v6 = vld [vmem:[%s1752_s6 + $0x78] sm:$0xff]  ;;  %v675_v7 = vld [vmem:[%s1752_s6 + $0x60] sm:$0xff]  ;;  %v673_v10 = vld [vmem:[%s1752_s6 + $0x50] sm:$0xff]  ;;  %vm910_vm6 = vcmask 15360  }
  0xa1   :  { %vm224_vm8 = vcmp.eq.s32.totalorder %v1501_v51, %v223_v14  ;;  %vm225_vm9 = vcmp.eq.s32.totalorder %v1504_v54, %v223_v14  ;;  %vm226_vm10 = vcmp.eq.s32.totalorder %v1507_v55, %v223_v14  ;;  %v674_v8 = vld [vmem:[%s1752_s6 + $0x58] sm:$0xff]  ;;  %v672_v11 = vld [vmem:[%s1752_s6 + $0x48] sm:$0xff]  ;;  %v671_v12 = vld [vmem:[%s1752_s6 + $0x40] sm:$0xff] }
  0xa2   :  { %v954_v18 = vsel %vm224_vm8, 1.0, %v1125_v9  ;;  %v955_v19 = vsel %vm225_vm9, 1.0, %v1125_v9  ;;  %v956_v20 = vsel %vm226_vm10, 1.0, %v1125_v9  ;;  %v669_v14 = vld [vmem:[%s1752_s6 + $0x30] sm:$0xff] }
  0xa3   :  { %v233_v2 = vadd.f32 %v954_v18, %v218_v13  ;;  %v234_v21 = vadd.f32 %v955_v19, %v219_v15  ;;  %v235_v23 = vadd.f32 %v956_v20, %v220_v17  ;;  %v670_v13 = vld [vmem:[%s1752_s6 + $0x38] sm:$0xff]  ;;  %v668_v15 = vld [vmem:[%s1752_s6 + $0x28] sm:$0xff]  ;;  %v665_v18 = vld [vmem:[%s1752_s6 + $0x10] sm:$0xff] }
  0xa4   :  { %v666_v17 = vld [vmem:[%s1752_s6 + $0x18] sm:$0xff]  ;;  %v664_v19 = vld [vmem:[%s1752_s6 + $0x8] sm:$0xff]  ;;  %v663_v20 = vld [vmem:[%s1752_s6] sm:$0xff] }
  0xa5   :  { %v238_v22 = vpop.permute.xlu1 %237 }
  0xa6   :  { %vm239_vm14 = vcmp.eq.s32.totalorder %v1501_v51, %v238_v22  ;;  %vm240_vm15 = vcmp.eq.s32.totalorder %v1504_v54, %v238_v22  ;;  %vm241_vm0 = vcmp.eq.s32.totalorder %v1507_v55, %v238_v22  ;;  %v985_v22 = vadd.s32 4294967295, %v1493_v46 }
  0xa7   :  { %v957_v24 = vsel %vm239_vm14, 1.0, %v1125_v9  ;;  %v958_v25 = vsel %vm240_vm15, 1.0, %v1125_v9  ;;  %v959_v26 = vsel %vm241_vm0, 1.0, %v1125_v9  ;;  %vm1141_vm14 = vmmov 0  }
  0xa8   :  { %v248_v29 = vadd.f32 %v957_v24, %v233_v2  ;;  %v249_v30 = vadd.f32 %v958_v25, %v234_v21  ;;  %v250_v31 = vadd.f32 %v959_v26, %v235_v23  ;;  %v651_v2 = vshrl.u32 %v37_v50, 7  ;;  %v648_v25 = vld [vmem:[%s1753_s5] sm:$0x3]  ;;  %s1142_s5 = smov 1  }
  0xa9   :  { %vm865_vm15 = vcmp.gt.s32.totalorder %v985_v22, 0 }
  0xaa   :  { %v263_v34 = vadd.f32 %v960_v27, %v248_v29  ;;  %v268_v35 = vpop.permute.xlu1 %267  ;;  %v264_v36 = vadd.f32 %v961_v32, %v249_v30  ;;  %v265_v37 = vadd.f32 %v962_v33, %v250_v31  ;;  %v652_v23 = vsub.s32 0, %v651_v2 }
  0xab   :  { %vm269_vm2 = vcmp.eq.s32.totalorder %v1501_v51, %v268_v35  ;;  %vm270_vm3 = vcmp.eq.s32.totalorder %v1504_v54, %v268_v35  ;;  %vm271_vm4 = vcmp.eq.s32.totalorder %v1507_v55, %v268_v35  ;;  %v866_v26 = vsel %vm865_vm15, %v985_v22, 0 }
  0xac   :  { %v963_v38 = vsel %vm269_vm2, 1.0, %v1125_v9  ;;  %v964_v39 = vsel %vm270_vm3, 1.0, %v1125_v9  ;;  %v965_v40 = vsel %vm271_vm4, 1.0, %v1125_v9  ;;  %v656_v27 = vsub.s32 1, %v651_v2  ;;  %868 = vperm.xlu0 %1111, %v866_v26  }
  0xad   :  { %v278_v1 = vadd.f32 %v963_v38, %v263_v34  ;;  %v279_v41 = vadd.f32 %v964_v39, %v264_v36  ;;  %v280_v45 = vadd.f32 %v965_v40, %v265_v37  ;;  %v653_v31 = vrot.slane %v648_v25, %v652_v23  ;;  %v764_v39 = vld [vmem:[%s1754_s8 + $0x38] sm:$0xff]  ;;  %v763_v40 = vld [vmem:[%s1754_s8 + $0x30] sm:$0xff] }
  0xae   :  { %v657_v34 = vrot.slane %v648_v25, %v656_v27  ;;  %vm772_vm3 = vcmask 523264   ;;  %vm893_vm4 = vcmask 56320  }
  0xaf   :  { %v283_v42 = vpop.permute.xlu1 %282 }
  0xb0   :  { %vm284_vm7 = vcmp.eq.s32.totalorder %v1501_v51, %v283_v42  ;;  %vm285_vm8 = vcmp.eq.s32.totalorder %v1504_v54, %v283_v42  ;;  %vm286_vm9 = vcmp.eq.s32.totalorder %v1507_v55, %v283_v42  ;;  %v760_v42 = vld [vmem:[%s1754_s8 + $0x18] sm:$0xff] }
  0xb1   :  { %v966_v47 = vsel %vm284_vm7, 1.0, %v1125_v9  ;;  %v967_v48 = vsel %vm285_vm8, 1.0, %v1125_v9  ;;  %v968_v49 = vsel %vm286_vm9, 1.0, %v1125_v9  ;;  %vm912_vm7 = vcmask 72704  }
  0xb2   :  { %v293_v53 = vadd.f32 %v966_v47, %v278_v1  ;;  %v294_v56 = vadd.f32 %v967_v48, %v279_v41  ;;  %v295_v57 = vadd.f32 %v968_v49, %v280_v45  ;;  %v762_v1 = vld [vmem:[%s1754_s8 + $0x28] sm:$0xff]  ;;  %v761_v41 = vld [vmem:[%s1754_s8 + $0x20] sm:$0xff] }
  0xb3   :  { %v757_v45 = vld [vmem:[%s1754_s8] sm:$0xff] }
  0xb4   :  { %v308_v58 = vadd.f32 %v969_v43, %v293_v53  ;;  %v309_v59 = vadd.f32 %v970_v44, %v294_v56  ;;  %v310_v60 = vadd.f32 %v971_v52, %v295_v57  ;;  %v313_v61 = vpop.permute.xlu1 %312  ;;  %v759_v43 = vld [vmem:[%s1754_s8 + $0x10] sm:$0xff]  ;;  %v758_v44 = vld [vmem:[%s1754_s8 + $0x8] sm:$0xff] }
  0xb5   :  { %vm314_vm10 = vcmp.eq.s32.totalorder %v1501_v51, %v313_v61  ;;  %vm315_vm11 = vcmp.eq.s32.totalorder %v1504_v54, %v313_v61  ;;  %vm316_vm12 = vcmp.eq.s32.totalorder %v1507_v55, %v313_v61  ;;  %v677_v54 = vld [vmem:[%s1752_s6 + $0x70] sm:$0xff]  ;;  %v676_v55 = vld [vmem:[%s1752_s6 + $0x68] sm:$0xff] }
  0xb6   :  { %v972_v62 = vsel %vm314_vm10, 1.0, %v1125_v9  ;;  %v973_v63 = vsel %vm315_vm11, 1.0, %v1125_v9  ;;  %v974_v0 = vsel %vm316_vm12, 1.0, %v1125_v9 }
  0xb7   :  { %v323_v3 = vadd.f32 %v972_v62, %v308_v58  ;;  %v325_v4 = vadd.f32 %v974_v0, %v310_v60  ;;  %v324_v5 = vadd.f32 %v973_v63, %v309_v59  ;;  %v981_v59 = vld [vmem:[%s1755_s7] ss:$0 sm:$0xff] }
  0xb9   :  { %570 = vmatprep.mubr.f32.mxu1 %v324_v5  ;;  %980 = vmatmul.mubr.msk.f32.vlgmr.msra.gmra.mxu0 %vm495_vm13, %v325_v4  ;;  %v860_v47 = vpop.permute.xlu1 %859 }
  0xba   :  { %571 = vmatmul.mubr.f32.vlgmr.msra.gmra.mxu1 %v323_v3  ;;  %1015 = vmatpush3.msra.mxu0 %v678_v6  ;;  %vm861_vm0 = vcmp.eq.s32.totalorder %v1501_v51, %v860_v47 }
  0xbb   :  { %1016 = vmatprep.subr.mxu0 %v1125_v9  ;;  %1046 = vmatprep.mubr.msk.f32.mxu0 %vm1141_vm14, %v1125_v9  ;;  %v984_v49 = vsel %vm861_vm0, 1.0, %v1125_v9 }
  0xbc   :  { %1017 = vmatpush3.msra.mxu0 %v677_v54 }
  0xbd   :  { %1018 = vmatprep.subr.mxu0 %v1125_v9  ;;  %v879_v48 = vpop.permute.xlu1 %878 }
  0xbe   :  { %1019 = vmatpush3.msra.mxu0 %v676_v55  ;;  %vm880_vm1 = vcmp.eq.s32.totalorder %v1501_v51, %v879_v48 }
  0xbf   :  { %1020 = vmatprep.subr.mxu0 %v1125_v9  ;;  %v987_v53 = vsel %vm880_vm1, 1.0, %v1125_v9 }
  0xc0   :  { %1021 = vmatpush3.msra.mxu0 %v675_v7 }
  0xc1   :  { %1022 = vmatprep.subr.mxu0 %v1125_v9 }
  0xc2   :  { %1023 = vmatpush3.msra.mxu0 %v674_v8 }
  0xc3   :  { %1024 = vmatprep.subr.mxu0 %v1125_v9 }
  0xc4   :  { %1025 = vmatpush3.msra.mxu0 %v673_v10 }
  0xc5   :  { %1026 = vmatprep.subr.mxu0 %v1125_v9 }
  0xc6   :  { %1027 = vmatpush3.msra.mxu0 %v672_v11 }
  0xc7   :  { %1028 = vmatprep.subr.mxu0 %v1125_v9 }
  0xc8   :  { %1029 = vmatpush3.msra.mxu0 %v671_v12 }
  0xc9   :  { %1030 = vmatprep.subr.mxu0 %v1125_v9  ;;  %v490_v21 = vpop.f32.mrf.mxu1 }
  0xca   :  { %1031 = vmatpush3.msra.mxu0 %v670_v13 }
  0xcb   :  { %1032 = vmatprep.subr.mxu0 %v1125_v9  ;;  %v492_v24 = vpop.f32.mrf.mxu1 }
  0xcc   :  { %1033 = vmatpush3.msra.mxu0 %v669_v14 }
  0xcd   :  { %1034 = vmatprep.subr.mxu0 %v1125_v9 }
  0xce   :  { %1035 = vmatpush3.msra.mxu0 %v668_v15 }
  0xcf   :  { %1036 = vmatprep.subr.mxu0 %v1125_v9 }
  0xd0   :  { %1037 = vmatpush3.msra.mxu0 %v667_v16 }
  0xd1   :  { %1038 = vmatprep.subr.mxu0 %v1125_v9 }
  0xd2   :  { %1039 = vmatpush3.msra.mxu0 %v666_v17 }
  0xd3   :  { %1040 = vmatprep.subr.mxu0 %v1125_v9 }
  0xd4   :  { %1041 = vmatpush3.msra.mxu0 %v665_v18 }
  0xd5   :  { %1042 = vmatprep.subr.mxu0 %v1125_v9 }
  0xd6   :  { %1043 = vmatpush3.msra.mxu0 %v664_v19 }
  0xd7   :  { %1044 = vmatprep.subr.mxu0 %v1125_v9 }
  0xd8   :  { %1045 = vmatpush3.msra.mxu0 %v663_v20 }
  0xd9   :  { %1049 = vmatprep.subr.mxu0 %v1125_v9 }
 0x127   :  { %v869_v52 = vpop.permute.xlu0 %868 }
 0x128   :  { %vm870_vm2 = vcmp.eq.s32.totalorder %v1501_v51, %v869_v52  ;;  %v982_v51 = vld [vmem:[%s1756_s9] ss:$0 sm:$0xff] }
 0x129   :  { %v986_v56 = vsel %vm870_vm2, 1.0, %v1125_v9 }
 0x12a   :  { %v873_v57 = vadd.f32 %v986_v56, %v984_v49 }
 0x12c   :  { %v883_v58 = vadd.f32 %v987_v53, %v873_v57 }
 0x12e   :  { %885 = vrot.lane.b32.xlu0 %v883_v58, %s1142_s5 }
 0x179   :  { %v643_v28 = vpop.f32.mrf.mxu0 }
 0x17a   :  { %v572_v29 = vpop.f32.mrf.mxu1 }
 0x17b   :  { %v573_v30 = vadd.f32 %v572_v29, %v490_v21  ;;  %v645_v35 = vpop.f32.mrf.mxu0 }
 0x17c   :  { %v574_v32 = vpop.f32.mrf.mxu1 }
 0x17d   :  { %v644_v33 = vadd.f32 %v643_v28, %v573_v30  ;;  %v575_v50 = vadd.f32 %v574_v32, %v492_v24 }
 0x17f   :  { %v660_v46 = vadd.f32 %v653_v31, %v644_v33  ;;  %v646_v36 = vadd.f32 %v645_v35, %v575_v50 }
 0x181   :  { %v662_v37 = vmax.f32 %v660_v46, 0.0  ;;  %v661_v38 = vadd.f32 %v657_v34, %v646_v36 }
 0x183   :  { %853 = vrot.lane.b32.xlu1 %v661_v38, %s1142_s5  ;;  %1047 = vmatmul.mubr.f32.vlgmr.msra.gmra.mxu0 %v662_v37 }
 0x184   :  { %1050 = vmatpush3.msra.mxu0 %v764_v39  ;;  %1065 = vmatprep.mubr.msk.f32.mxu0 %vm1141_vm14, %v1125_v9 }
 0x185   :  { %1051 = vmatprep.subr.mxu0 %v1125_v9 }
 0x186   :  { %1052 = vmatpush3.msra.mxu0 %v763_v40 }
 0x187   :  { %1053 = vmatprep.subr.mxu0 %v1125_v9 }
 0x188   :  { %1054 = vmatpush3.msra.mxu0 %v762_v1 }
 0x189   :  { %1055 = vmatprep.subr.mxu0 %v1125_v9 }
 0x18a   :  { %1056 = vmatpush3.msra.mxu0 %v761_v41 }
 0x18b   :  { %1057 = vmatprep.subr.mxu0 %v1125_v9 }
 0x18c   :  { %1058 = vmatpush3.msra.mxu0 %v760_v42 }
 0x18d   :  { %1059 = vmatprep.subr.mxu0 %v1125_v9 }
 0x18e   :  { %1060 = vmatpush3.msra.mxu0 %v759_v43 }
 0x18f   :  { %1061 = vmatprep.subr.mxu0 %v1125_v9 }
 0x190   :  { %1062 = vmatpush3.msra.mxu0 %v758_v44 }
 0x191   :  { %1063 = vmatprep.subr.mxu0 %v1125_v9 }
 0x192   :  { %1064 = vmatpush3.msra.mxu0 %v757_v45 }
 0x1a0   :  { %v886_v6 = vpop.permute.xlu0 %885 }
 0x1f5   :  { %v854_v3 = vpop.permute.xlu1 %853 }
 0x243   :  { %v752_v60 = vpop.f32.mrf.mxu0 }
 0x244   :  { %v753_v61 = vadd.f32 %v981_v59, %v752_v60 }
 0x245   :  { %v1048_v62 = vpop.f32.mrf.mxu0 }
 0x246   :  { %v756_v63 = vmax.f32 %v753_v61, 0.0 }
 0x248   :  { %1066 = vmatmul.mubr.msk.f32.vlgmr.msra.gmra.mxu0 %vm772_vm3, %v756_v63 }
 0x308   :  { %v842_v0 = vpop.f32.mrf.mxu0 }
 0x309   :  { %v843_v9 = vadd.f32 %v982_v51, %v842_v0 }
 0x30a   :  { %v1067_v4 = vpop.f32.mrf.mxu0 }
 0x30b   :  { %v856_v5 = vadd.f32 %v854_v3, %v843_v9  ;;  %v846_v8 = vsub.f32 0.0, %v843_v9 }
 0x30d   :  { %v888_v54 = vmul.f32 %v886_v6, %v856_v5  ;;  %v847_v10 = vmul.f32 1.442695, %v846_v8 }
 0x30f   :  { %890 = vrot.lane.b32.xlu1 %v888_v54, %s1143_s29  ;;  %1113 = vpow2.f32 %v847_v10 }
 0x313   :  { %905 = vrot.lane.b32.xlu1 %v856_v5, %s1142_s5 }
 0x31c   :  { %v1114_v15 = vpop.eup %1113 }
 0x31d   :  { %v849_v16 = vadd.f32 1.0, %v1114_v15 }
 0x381   :  { %v891_v55 = vpop.permute.xlu1 %890 }
 0x382   :  { %v894_v7 = vsel %vm893_vm4, %v891_v55, 0.0 }
 0x383   :  { %895 = vadd.xlane.f32.xlu0 %v894_v7 }
 0x385   :  { %v906_v2 = vpop.permute.xlu1 %905 }
 0x40c   :  { %v896_v11 = vpop.xlane.xlu0 %895 }
 0x40d   :  { %v897_v12 = vmul.f32 0.33333334, %v896_v11 }
 0x40f   :  { %v898_v13 = vsub.f32 0.0, %v897_v12 }
 0x411   :  { %v899_v14 = vmul.f32 1.442695, %v898_v13 }
 0x413   :  { %1115 = vpow2.f32 %v899_v14 }
 0x414   :  { %1117 = vrcp.f32 %v849_v16 }
 0x420   :  { %v1116_v17 = vpop.eup %1115 }
 0x421   :  { %v901_v18 = vadd.f32 1.0, %v1116_v17  ;;  %v1118_v19 = vpop.eup %1117 }
 0x423   :  { %1119 = vrcp.f32 %v901_v18 }
 0x430   :  { %v1120_v20 = vpop.eup %1119 }
 0x431   :  { %v909_v21 = vsel %vm908_vm5, %v1118_v19, %v1120_v20 }
 0x432   :  { %v911_v22 = vsel %vm910_vm6, %v909_v21, %v906_v2 }
 0x433   :  { %913 = vst.msk [vmem:[%s1757_s10] sm:$0xff] %vm912_vm7, %v911_v22 }

</bundles_post_ra>
